<compile_context>
chip_gen: v5e
topology: v5e:2x2
jax: 0.10.0
libtpu: 0.0.40
codegen_flags: <defaults>
</compile_context>

<pallas_src>
import math

import jax
import jax.numpy as jnp
from jax.experimental import pallas as pl
from jax.experimental.pallas import tpu as pltpu

# ----------------------------- config -------------------------------------
VOCAB = 64
TYPE_VOCAB = 2
MAX_POS = 16
HIDDEN = 32
N_HEADS = 2
HEAD_DIM = HIDDEN // N_HEADS
INTERMEDIATE = 64
N_LAYERS = 2
LN_EPS = 1e-12

BATCH = 2
SEQ = 8
TOKENS = BATCH * SEQ
ATTN_SCALE = 1.0 / math.sqrt(HEAD_DIM)


# --------------------------- kernel helpers --------------------------------
def _layernorm(x, gamma, beta, eps=LN_EPS):
    mu = jnp.mean(x, axis=-1, keepdims=True)
    var = jnp.mean((x - mu) * (x - mu), axis=-1, keepdims=True)
    return (x - mu) * jax.lax.rsqrt(var + eps) * gamma + beta


def _gelu(x):
    # exact (erf-based) GELU as in the original BERT implementation
    return x * 0.5 * (1.0 + jax.lax.erf(x / math.sqrt(2.0)))


# -------------------------- fused Pallas kernel ------------------------------
def bert_kernel(emb_ref, mb_ref, eg_ref, eb_ref,
                wq_ref, bq_ref, wk_ref, bk_ref, wv_ref, bv_ref,
                wo_ref, bo_ref, g1_ref, be1_ref,
                w1_ref, bf1_ref, w2_ref, bf2_ref, g2_ref, be2_ref,
                o_ref):
    f32 = jnp.float32
    bf16 = jnp.bfloat16

    # ---- embedding layernorm ----
    x = _layernorm(emb_ref[...], eg_ref[...], eb_ref[...])         # (T, H) f32

    # hoisted: additive attention-mask bias, reused by every layer & head
    mb = jnp.broadcast_to(mb_ref[...], (BATCH, SEQ, SEQ))          # (B, S, S)

    # ---- encoder layers (static unroll; all weights resident in VMEM) ----
    for l in range(N_LAYERS):
        xb = x.astype(bf16)                                        # matmul lhs

        attn = jnp.zeros((TOKENS, HIDDEN), f32)
        for h in range(N_HEADS):
            # head-sliced weights (static leading-index views -> no lane
            # slicing of activations, no concatenate)
            q = jnp.dot(xb, wq_ref[l, h],
                        preferred_element_type=f32) + bq_ref[l, h]  # (T, D)
            k = jnp.dot(xb, wk_ref[l, h],
                        preferred_element_type=f32) + bk_ref[l, h]
            v = jnp.dot(xb, wv_ref[l, h],
                        preferred_element_type=f32) + bv_ref[l, h]

            q3 = q.reshape(BATCH, SEQ, HEAD_DIM).astype(bf16)
            k3 = k.reshape(BATCH, SEQ, HEAD_DIM).astype(bf16)
            v3 = v.reshape(BATCH, SEQ, HEAD_DIM).astype(bf16)

            s = jnp.einsum('bqd,bkd->bqk', q3, k3,
                           preferred_element_type=f32)             # (B, S, S)
            s = s * ATTN_SCALE + mb
            s = s - jnp.max(s, axis=-1, keepdims=True)
            p = jnp.exp(s)
            denom = jnp.sum(p, axis=-1, keepdims=True)

            ctx = jnp.einsum('bqk,bkd->bqd', p.astype(bf16), v3,
                             preferred_element_type=f32)           # (B, S, D)
            # normalize after the p@V matmul; approx reciprocal -> EUP slot
            ctx = ctx * pl.reciprocal(denom, approx=True)

            ctx2 = ctx.reshape(TOKENS, HEAD_DIM).astype(bf16)
            # fold the per-head output projection directly into the accumulator
            attn = attn + jnp.dot(ctx2, wo_ref[l, h],
                                  preferred_element_type=f32)      # (T, H)

        attn = attn + bo_ref[l]
        h1 = _layernorm(attn + x, g1_ref[l], be1_ref[l])           # (T, H) f32

        # ---- feed forward ----
        ff = jnp.dot(h1.astype(bf16), w1_ref[l],
                     preferred_element_type=f32) + bf1_ref[l]      # (T, I)
        ff = _gelu(ff)
        ff2 = jnp.dot(ff.astype(bf16), w2_ref[l],
                      preferred_element_type=f32) + bf2_ref[l]     # (T, H)
        x = _layernorm(ff2 + h1, g2_ref[l], be2_ref[l])

    o_ref[...] = x


# --------------------------- pallas wrapper ----------------------------------
def bert_encoder(emb2, mask_bias, p):
    # Single kernel invocation, no grid: every operand is a whole-array VMEM
    # block (block shape == full array dims, so the (8,128) rule is satisfied).
    return pl.pallas_call(
        bert_kernel,
        out_shape=jax.ShapeDtypeStruct((TOKENS, HIDDEN), jnp.float32),
    )(emb2, mask_bias, p["emb_g"], p["emb_b"],
      p["wq"], p["bq"], p["wk"], p["bk"], p["wv"], p["bv"],
      p["wo"], p["bo"], p["g1"], p["be1"],
      p["w1"], p["bf1"], p["w2"], p["bf2"], p["g2"], p["be2"])


# ------------------------------ model --------------------------------------
def init_params(key):
    bf16 = jnp.bfloat16
    L, NH, H, D, I = N_LAYERS, N_HEADS, HIDDEN, HEAD_DIM, INTERMEDIATE

    def nrm(k, shape, scale=0.02, dtype=jnp.float32):
        return (scale * jax.random.normal(k, shape, jnp.float32)).astype(dtype)

    keys = iter(jax.random.split(key, 16))
    # Matmul weights stacked per layer (+ per head for attention), stored in
    # bf16 (MXU-native); biases / layernorm params stay in f32.
    params = {
        "word_emb": nrm(next(keys), (VOCAB, H)),
        "pos_emb": nrm(next(keys), (MAX_POS, H)),
        "tok_emb": nrm(next(keys), (TYPE_VOCAB, H)),
        "emb_g": jnp.ones((1, H), jnp.float32),
        "emb_b": jnp.zeros((1, H), jnp.float32),
        "wq": nrm(next(keys), (L, NH, H, D), dtype=bf16),
        "bq": jnp.zeros((L, NH, 1, D), jnp.float32),
        "wk": nrm(next(keys), (L, NH, H, D), dtype=bf16),
        "bk": jnp.zeros((L, NH, 1, D), jnp.float32),
        "wv": nrm(next(keys), (L, NH, H, D), dtype=bf16),
        "bv": jnp.zeros((L, NH, 1, D), jnp.float32),
        "wo": nrm(next(keys), (L, NH, D, H), dtype=bf16),
        "bo": jnp.zeros((L, 1, H), jnp.float32),
        "g1": jnp.ones((L, 1, H), jnp.float32),
        "be1": jnp.zeros((L, 1, H), jnp.float32),
        "w1": nrm(next(keys), (L, H, I), dtype=bf16),
        "bf1": jnp.zeros((L, 1, I), jnp.float32),
        "w2": nrm(next(keys), (L, I, H), dtype=bf16),
        "bf2": jnp.zeros((L, 1, H), jnp.float32),
        "g2": jnp.ones((L, 1, H), jnp.float32),
        "be2": jnp.zeros((L, 1, H), jnp.float32),
    }
    return params


@jax.jit
def bert_forward(params, x, segs, mask):
    """Mirrors Bert.forward: returns the top encoder layer (top_vec)."""
    B, S = x.shape
    pos_ids = jnp.arange(S, dtype=jnp.int32)

    # ---- embeddings (table gathers are JAX glue) ----
    emb = (params["word_emb"][x]
           + params["pos_emb"][pos_ids][None, :, :]
           + params["tok_emb"][segs])                              # (B, S, H)
    emb2 = emb.reshape(B * S, HIDDEN)

    # ---- extended attention mask: (1 - mask) * -10000, shape (B, 1, S) ----
    mask_bias = ((1.0 - mask.astype(jnp.float32)) * -10000.0).reshape(B, 1, S)

    out2 = bert_encoder(emb2, mask_bias, params)                   # (B*S, H)
    top_vec = out2.reshape(B, S, HIDDEN)
    return top_vec


# ------------------------------- main ---------------------------------------
if __name__ == "__main__":
    key = jax.random.PRNGKey(0)
    pkey, xkey, skey = jax.random.split(key, 3)

    params = init_params(pkey)

    x = jax.random.randint(xkey, (BATCH, SEQ), 0, VOCAB, dtype=jnp.int32)
    segs = jax.random.randint(skey, (BATCH, SEQ), 0, TYPE_VOCAB, dtype=jnp.int32)
    # pad the last two tokens of the second sequence to exercise the mask
    mask = jnp.ones((BATCH, SEQ), jnp.int32).at[1, -2:].set(0)

    top_vec = bert_forward(params, x, segs, mask)
    jax.block_until_ready(top_vec)

    assert top_vec.shape == (BATCH, SEQ, HIDDEN)
    assert bool(jnp.all(jnp.isfinite(top_vec)))
    print("KERNEL_OK")
</pallas_src>

<mosaic_0001>
module attributes {stable_mosaic.version = 11 : i64} {
  func.func @bert_kernel(%arg0: memref<16x32xf32, #tpu.memory_space<vmem>>, %arg1: memref<2x1x8xf32, #tpu.memory_space<vmem>>, %arg2: memref<1x32xf32, #tpu.memory_space<vmem>>, %arg3: memref<1x32xf32, #tpu.memory_space<vmem>>, %arg4: memref<2x2x32x16xbf16, #tpu.memory_space<vmem>>, %arg5: memref<2x2x1x16xf32, #tpu.memory_space<vmem>>, %arg6: memref<2x2x32x16xbf16, #tpu.memory_space<vmem>>, %arg7: memref<2x2x1x16xf32, #tpu.memory_space<vmem>>, %arg8: memref<2x2x32x16xbf16, #tpu.memory_space<vmem>>, %arg9: memref<2x2x1x16xf32, #tpu.memory_space<vmem>>, %arg10: memref<2x2x16x32xbf16, #tpu.memory_space<vmem>>, %arg11: memref<2x1x32xf32, #tpu.memory_space<vmem>>, %arg12: memref<2x1x32xf32, #tpu.memory_space<vmem>>, %arg13: memref<2x1x32xf32, #tpu.memory_space<vmem>>, %arg14: memref<2x32x64xbf16, #tpu.memory_space<vmem>>, %arg15: memref<2x1x64xf32, #tpu.memory_space<vmem>>, %arg16: memref<2x64x32xbf16, #tpu.memory_space<vmem>>, %arg17: memref<2x1x32xf32, #tpu.memory_space<vmem>>, %arg18: memref<2x1x32xf32, #tpu.memory_space<vmem>>, %arg19: memref<2x1x32xf32, #tpu.memory_space<vmem>>, %arg20: memref<16x32xf32, #tpu.memory_space<vmem>>) attributes {dimension_semantics = [], scalar_prefetch = 0 : i64, scratch_operands = 0 : i64, tpu.core_type = #tpu.core_type<tc>} {
    %c0 = arith.constant 0 : index
    %c0_0 = arith.constant 0 : index
    %0 = vector.load %arg0[%c0, %c0_0] : memref<16x32xf32, #tpu.memory_space<vmem>>, vector<16x32xf32>
    %c0_1 = arith.constant 0 : index
    %c0_2 = arith.constant 0 : index
    %1 = vector.load %arg2[%c0_1, %c0_2] : memref<1x32xf32, #tpu.memory_space<vmem>>, vector<1x32xf32>
    %c0_3 = arith.constant 0 : index
    %c0_4 = arith.constant 0 : index
    %2 = vector.load %arg3[%c0_3, %c0_4] : memref<1x32xf32, #tpu.memory_space<vmem>>, vector<1x32xf32>
    %cst = arith.constant dense<0.000000e+00> : vector<16xf32>
    %3 = vector.multi_reduction <add>, %0, %cst [1] : vector<16x32xf32> to vector<16xf32>
    %4 = vector.shape_cast %3 : vector<16xf32> to vector<16x1xf32>
    %cst_5 = arith.constant 3.200000e+01 : f32
    %5 = vector.broadcast %cst_5 : f32 to vector<16x1xf32>
    %6 = arith.divf %4, %5 : vector<16x1xf32>
    %7 = vector.broadcast %6 : vector<16x1xf32> to vector<16x32xf32>
    %8 = arith.subf %0, %7 : vector<16x32xf32>
    %9 = vector.broadcast %6 : vector<16x1xf32> to vector<16x32xf32>
    %10 = arith.subf %0, %9 : vector<16x32xf32>
    %11 = arith.mulf %8, %10 : vector<16x32xf32>
    %cst_6 = arith.constant dense<0.000000e+00> : vector<16xf32>
    %12 = vector.multi_reduction <add>, %11, %cst_6 [1] : vector<16x32xf32> to vector<16xf32>
    %13 = vector.shape_cast %12 : vector<16xf32> to vector<16x1xf32>
    %cst_7 = arith.constant 3.200000e+01 : f32
    %14 = vector.broadcast %cst_7 : f32 to vector<16x1xf32>
    %15 = arith.divf %13, %14 : vector<16x1xf32>
    %16 = vector.broadcast %6 : vector<16x1xf32> to vector<16x32xf32>
    %17 = arith.subf %0, %16 : vector<16x32xf32>
    %cst_8 = arith.constant 9.99999996E-13 : f32
    %18 = vector.broadcast %cst_8 : f32 to vector<16x1xf32>
    %19 = arith.addf %15, %18 : vector<16x1xf32>
    %20 = math.rsqrt %19 : vector<16x1xf32>
    %21 = vector.broadcast %20 : vector<16x1xf32> to vector<16x32xf32>
    %22 = arith.mulf %17, %21 : vector<16x32xf32>
    %23 = vector.broadcast %1 : vector<1x32xf32> to vector<16x32xf32>
    %24 = arith.mulf %22, %23 : vector<16x32xf32>
    %25 = vector.broadcast %2 : vector<1x32xf32> to vector<16x32xf32>
    %26 = arith.addf %24, %25 : vector<16x32xf32>
    %c0_9 = arith.constant 0 : index
    %c0_10 = arith.constant 0 : index
    %c0_11 = arith.constant 0 : index
    %27 = vector.load %arg1[%c0_9, %c0_10, %c0_11] : memref<2x1x8xf32, #tpu.memory_space<vmem>>, vector<2x1x8xf32>
    %28 = vector.shape_cast %27 : vector<2x1x8xf32> to vector<2x1x8xf32>
    %29 = vector.broadcast %28 : vector<2x1x8xf32> to vector<2x8x8xf32>
    %30 = arith.truncf %26 : vector<16x32xf32> to vector<16x32xbf16>
    %cst_12 = arith.constant 0.000000e+00 : f32
    %31 = vector.broadcast %cst_12 : f32 to vector<16x32xf32>
    %c0_13 = arith.constant 0 : index
    %c0_14 = arith.constant 0 : index
    %c0_15 = arith.constant 0 : index
    %c0_16 = arith.constant 0 : index
    %32 = vector.load %arg4[%c0_13, %c0_14, %c0_15, %c0_16] : memref<2x2x32x16xbf16, #tpu.memory_space<vmem>>, vector<1x1x32x16xbf16>
    %33 = vector.shape_cast %32 : vector<1x1x32x16xbf16> to vector<32x16xbf16>
    %cst_17 = arith.constant dense<0.000000e+00> : vector<16x16xf32>
    %34 = tpu.matmul %30, %33, %cst_17 {dimension_numbers = #tpu.dot_dimension_numbers<[1], [0], [0], [1], [0, 0, 1, 1], [], []>} : vector<16x32xbf16>, vector<32x16xbf16>, vector<16x16xf32> -> vector<16x16xf32>
    %c0_18 = arith.constant 0 : index
    %c0_19 = arith.constant 0 : index
    %c0_20 = arith.constant 0 : index
    %c0_21 = arith.constant 0 : index
    %35 = vector.load %arg5[%c0_18, %c0_19, %c0_20, %c0_21] : memref<2x2x1x16xf32, #tpu.memory_space<vmem>>, vector<1x1x1x16xf32>
    %36 = vector.shape_cast %35 : vector<1x1x1x16xf32> to vector<1x16xf32>
    %37 = vector.broadcast %36 : vector<1x16xf32> to vector<16x16xf32>
    %38 = arith.addf %34, %37 : vector<16x16xf32>
    %c0_22 = arith.constant 0 : index
    %c0_23 = arith.constant 0 : index
    %c0_24 = arith.constant 0 : index
    %c0_25 = arith.constant 0 : index
    %39 = vector.load %arg6[%c0_22, %c0_23, %c0_24, %c0_25] : memref<2x2x32x16xbf16, #tpu.memory_space<vmem>>, vector<1x1x32x16xbf16>
    %40 = vector.shape_cast %39 : vector<1x1x32x16xbf16> to vector<32x16xbf16>
    %cst_26 = arith.constant dense<0.000000e+00> : vector<16x16xf32>
    %41 = tpu.matmul %30, %40, %cst_26 {dimension_numbers = #tpu.dot_dimension_numbers<[1], [0], [0], [1], [0, 0, 1, 1], [], []>} : vector<16x32xbf16>, vector<32x16xbf16>, vector<16x16xf32> -> vector<16x16xf32>
    %c0_27 = arith.constant 0 : index
    %c0_28 = arith.constant 0 : index
    %c0_29 = arith.constant 0 : index
    %c0_30 = arith.constant 0 : index
    %42 = vector.load %arg7[%c0_27, %c0_28, %c0_29, %c0_30] : memref<2x2x1x16xf32, #tpu.memory_space<vmem>>, vector<1x1x1x16xf32>
    %43 = vector.shape_cast %42 : vector<1x1x1x16xf32> to vector<1x16xf32>
    %44 = vector.broadcast %43 : vector<1x16xf32> to vector<16x16xf32>
    %45 = arith.addf %41, %44 : vector<16x16xf32>
    %c0_31 = arith.constant 0 : index
    %c0_32 = arith.constant 0 : index
    %c0_33 = arith.constant 0 : index
    %c0_34 = arith.constant 0 : index
    %46 = vector.load %arg8[%c0_31, %c0_32, %c0_33, %c0_34] : memref<2x2x32x16xbf16, #tpu.memory_space<vmem>>, vector<1x1x32x16xbf16>
    %47 = vector.shape_cast %46 : vector<1x1x32x16xbf16> to vector<32x16xbf16>
    %cst_35 = arith.constant dense<0.000000e+00> : vector<16x16xf32>
    %48 = tpu.matmul %30, %47, %cst_35 {dimension_numbers = #tpu.dot_dimension_numbers<[1], [0], [0], [1], [0, 0, 1, 1], [], []>} : vector<16x32xbf16>, vector<32x16xbf16>, vector<16x16xf32> -> vector<16x16xf32>
    %c0_36 = arith.constant 0 : index
    %c0_37 = arith.constant 0 : index
    %c0_38 = arith.constant 0 : index
    %c0_39 = arith.constant 0 : index
    %49 = vector.load %arg9[%c0_36, %c0_37, %c0_38, %c0_39] : memref<2x2x1x16xf32, #tpu.memory_space<vmem>>, vector<1x1x1x16xf32>
    %50 = vector.shape_cast %49 : vector<1x1x1x16xf32> to vector<1x16xf32>
    %51 = vector.broadcast %50 : vector<1x16xf32> to vector<16x16xf32>
    %52 = arith.addf %48, %51 : vector<16x16xf32>
    %53 = vector.shape_cast %38 : vector<16x16xf32> to vector<2x8x16xf32>
    %54 = arith.truncf %53 : vector<2x8x16xf32> to vector<2x8x16xbf16>
    %55 = vector.shape_cast %45 : vector<16x16xf32> to vector<2x8x16xf32>
    %56 = arith.truncf %55 : vector<2x8x16xf32> to vector<2x8x16xbf16>
    %57 = vector.shape_cast %52 : vector<16x16xf32> to vector<2x8x16xf32>
    %58 = arith.truncf %57 : vector<2x8x16xf32> to vector<2x8x16xbf16>
    "tpu.trace_start"() <{level = 10 : i32, message = "bqd,bkd->bqk"}> : () -> ()
    %cst_40 = arith.constant dense<0.000000e+00> : vector<2x8x8xf32>
    %59 = tpu.matmul %54, %56, %cst_40 {dimension_numbers = #tpu.dot_dimension_numbers<[2], [2], [1], [1], [0, 0, 0, 1, 1, 1], [0], [0]>} : vector<2x8x16xbf16>, vector<2x8x16xbf16>, vector<2x8x8xf32> -> vector<2x8x8xf32>
    "tpu.trace_stop"() : () -> ()
    %cst_41 = arith.constant 2.500000e-01 : f32
    %60 = vector.broadcast %cst_41 : f32 to vector<2x8x8xf32>
    %61 = arith.mulf %59, %60 : vector<2x8x8xf32>
    %62 = arith.addf %61, %29 : vector<2x8x8xf32>
    %cst_42 = arith.constant dense<0xFF800000> : vector<2x8xf32>
    %63 = vector.multi_reduction <maximumf>, %62, %cst_42 [2] : vector<2x8x8xf32> to vector<2x8xf32>
    %64 = vector.shape_cast %63 : vector<2x8xf32> to vector<2x8x1xf32>
    %65 = vector.broadcast %64 : vector<2x8x1xf32> to vector<2x8x8xf32>
    %66 = arith.subf %62, %65 : vector<2x8x8xf32>
    %67 = math.exp %66 : vector<2x8x8xf32>
    %cst_43 = arith.constant dense<0.000000e+00> : vector<2x8xf32>
    %68 = vector.multi_reduction <add>, %67, %cst_43 [2] : vector<2x8x8xf32> to vector<2x8xf32>
    %69 = vector.shape_cast %68 : vector<2x8xf32> to vector<2x8x1xf32>
    %70 = arith.truncf %67 : vector<2x8x8xf32> to vector<2x8x8xbf16>
    "tpu.trace_start"() <{level = 10 : i32, message = "bqk,bkd->bqd"}> : () -> ()
    %cst_44 = arith.constant dense<0.000000e+00> : vector<2x8x16xf32>
    %71 = tpu.matmul %70, %58, %cst_44 {dimension_numbers = #tpu.dot_dimension_numbers<[2], [1], [1], [2], [0, 0, 0, 1, 1, 2], [0], [0]>} : vector<2x8x8xbf16>, vector<2x8x16xbf16>, vector<2x8x16xf32> -> vector<2x8x16xf32>
    "tpu.trace_stop"() : () -> ()
    %72 = tpu.reciprocal %69 {approx = true} : vector<2x8x1xf32> -> vector<2x8x1xf32>
    %73 = vector.broadcast %72 : vector<2x8x1xf32> to vector<2x8x16xf32>
    %74 = arith.mulf %71, %73 : vector<2x8x16xf32>
    %75 = vector.shape_cast %74 : vector<2x8x16xf32> to vector<16x16xf32>
    %76 = arith.truncf %75 : vector<16x16xf32> to vector<16x16xbf16>
    %c0_45 = arith.constant 0 : index
    %c0_46 = arith.constant 0 : index
    %c0_47 = arith.constant 0 : index
    %c0_48 = arith.constant 0 : index
    %77 = vector.load %arg10[%c0_45, %c0_46, %c0_47, %c0_48] : memref<2x2x16x32xbf16, #tpu.memory_space<vmem>>, vector<1x1x16x32xbf16>
    %78 = vector.shape_cast %77 : vector<1x1x16x32xbf16> to vector<16x32xbf16>
    %cst_49 = arith.constant dense<0.000000e+00> : vector<16x32xf32>
    %79 = tpu.matmul %76, %78, %cst_49 {dimension_numbers = #tpu.dot_dimension_numbers<[1], [0], [0], [1], [0, 0, 1, 1], [], []>} : vector<16x16xbf16>, vector<16x32xbf16>, vector<16x32xf32> -> vector<16x32xf32>
    %80 = arith.addf %31, %79 : vector<16x32xf32>
    %c0_50 = arith.constant 0 : index
    %c1 = arith.constant 1 : index
    %c0_51 = arith.constant 0 : index
    %c0_52 = arith.constant 0 : index
    %81 = vector.load %arg4[%c0_50, %c1, %c0_51, %c0_52] : memref<2x2x32x16xbf16, #tpu.memory_space<vmem>>, vector<1x1x32x16xbf16>
    %82 = vector.shape_cast %81 : vector<1x1x32x16xbf16> to vector<32x16xbf16>
    %cst_53 = arith.constant dense<0.000000e+00> : vector<16x16xf32>
    %83 = tpu.matmul %30, %82, %cst_53 {dimension_numbers = #tpu.dot_dimension_numbers<[1], [0], [0], [1], [0, 0, 1, 1], [], []>} : vector<16x32xbf16>, vector<32x16xbf16>, vector<16x16xf32> -> vector<16x16xf32>
    %c0_54 = arith.constant 0 : index
    %c1_55 = arith.constant 1 : index
    %c0_56 = arith.constant 0 : index
    %c0_57 = arith.constant 0 : index
    %84 = vector.load %arg5[%c0_54, %c1_55, %c0_56, %c0_57] : memref<2x2x1x16xf32, #tpu.memory_space<vmem>>, vector<1x1x1x16xf32>
    %85 = vector.shape_cast %84 : vector<1x1x1x16xf32> to vector<1x16xf32>
    %86 = vector.broadcast %85 : vector<1x16xf32> to vector<16x16xf32>
    %87 = arith.addf %83, %86 : vector<16x16xf32>
    %c0_58 = arith.constant 0 : index
    %c1_59 = arith.constant 1 : index
    %c0_60 = arith.constant 0 : index
    %c0_61 = arith.constant 0 : index
    %88 = vector.load %arg6[%c0_58, %c1_59, %c0_60, %c0_61] : memref<2x2x32x16xbf16, #tpu.memory_space<vmem>>, vector<1x1x32x16xbf16>
    %89 = vector.shape_cast %88 : vector<1x1x32x16xbf16> to vector<32x16xbf16>
    %cst_62 = arith.constant dense<0.000000e+00> : vector<16x16xf32>
    %90 = tpu.matmul %30, %89, %cst_62 {dimension_numbers = #tpu.dot_dimension_numbers<[1], [0], [0], [1], [0, 0, 1, 1], [], []>} : vector<16x32xbf16>, vector<32x16xbf16>, vector<16x16xf32> -> vector<16x16xf32>
    %c0_63 = arith.constant 0 : index
    %c1_64 = arith.constant 1 : index
    %c0_65 = arith.constant 0 : index
    %c0_66 = arith.constant 0 : index
    %91 = vector.load %arg7[%c0_63, %c1_64, %c0_65, %c0_66] : memref<2x2x1x16xf32, #tpu.memory_space<vmem>>, vector<1x1x1x16xf32>
    %92 = vector.shape_cast %91 : vector<1x1x1x16xf32> to vector<1x16xf32>
    %93 = vector.broadcast %92 : vector<1x16xf32> to vector<16x16xf32>
    %94 = arith.addf %90, %93 : vector<16x16xf32>
    %c0_67 = arith.constant 0 : index
    %c1_68 = arith.constant 1 : index
    %c0_69 = arith.constant 0 : index
    %c0_70 = arith.constant 0 : index
    %95 = vector.load %arg8[%c0_67, %c1_68, %c0_69, %c0_70] : memref<2x2x32x16xbf16, #tpu.memory_space<vmem>>, vector<1x1x32x16xbf16>
    %96 = vector.shape_cast %95 : vector<1x1x32x16xbf16> to vector<32x16xbf16>
    %cst_71 = arith.constant dense<0.000000e+00> : vector<16x16xf32>
    %97 = tpu.matmul %30, %96, %cst_71 {dimension_numbers = #tpu.dot_dimension_numbers<[1], [0], [0], [1], [0, 0, 1, 1], [], []>} : vector<16x32xbf16>, vector<32x16xbf16>, vector<16x16xf32> -> vector<16x16xf32>
    %c0_72 = arith.constant 0 : index
    %c1_73 = arith.constant 1 : index
    %c0_74 = arith.constant 0 : index
    %c0_75 = arith.constant 0 : index
    %98 = vector.load %arg9[%c0_72, %c1_73, %c0_74, %c0_75] : memref<2x2x1x16xf32, #tpu.memory_space<vmem>>, vector<1x1x1x16xf32>
    %99 = vector.shape_cast %98 : vector<1x1x1x16xf32> to vector<1x16xf32>
    %100 = vector.broadcast %99 : vector<1x16xf32> to vector<16x16xf32>
    %101 = arith.addf %97, %100 : vector<16x16xf32>
    %102 = vector.shape_cast %87 : vector<16x16xf32> to vector<2x8x16xf32>
    %103 = arith.truncf %102 : vector<2x8x16xf32> to vector<2x8x16xbf16>
    %104 = vector.shape_cast %94 : vector<16x16xf32> to vector<2x8x16xf32>
    %105 = arith.truncf %104 : vector<2x8x16xf32> to vector<2x8x16xbf16>
    %106 = vector.shape_cast %101 : vector<16x16xf32> to vector<2x8x16xf32>
    %107 = arith.truncf %106 : vector<2x8x16xf32> to vector<2x8x16xbf16>
    "tpu.trace_start"() <{level = 10 : i32, message = "bqd,bkd->bqk"}> : () -> ()
    %cst_76 = arith.constant dense<0.000000e+00> : vector<2x8x8xf32>
    %108 = tpu.matmul %103, %105, %cst_76 {dimension_numbers = #tpu.dot_dimension_numbers<[2], [2], [1], [1], [0, 0, 0, 1, 1, 1], [0], [0]>} : vector<2x8x16xbf16>, vector<2x8x16xbf16>, vector<2x8x8xf32> -> vector<2x8x8xf32>
    "tpu.trace_stop"() : () -> ()
    %cst_77 = arith.constant 2.500000e-01 : f32
    %109 = vector.broadcast %cst_77 : f32 to vector<2x8x8xf32>
    %110 = arith.mulf %108, %109 : vector<2x8x8xf32>
    %111 = arith.addf %110, %29 : vector<2x8x8xf32>
    %cst_78 = arith.constant dense<0xFF800000> : vector<2x8xf32>
    %112 = vector.multi_reduction <maximumf>, %111, %cst_78 [2] : vector<2x8x8xf32> to vector<2x8xf32>
    %113 = vector.shape_cast %112 : vector<2x8xf32> to vector<2x8x1xf32>
    %114 = vector.broadcast %113 : vector<2x8x1xf32> to vector<2x8x8xf32>
    %115 = arith.subf %111, %114 : vector<2x8x8xf32>
    %116 = math.exp %115 : vector<2x8x8xf32>
    %cst_79 = arith.constant dense<0.000000e+00> : vector<2x8xf32>
    %117 = vector.multi_reduction <add>, %116, %cst_79 [2] : vector<2x8x8xf32> to vector<2x8xf32>
    %118 = vector.shape_cast %117 : vector<2x8xf32> to vector<2x8x1xf32>
    %119 = arith.truncf %116 : vector<2x8x8xf32> to vector<2x8x8xbf16>
    "tpu.trace_start"() <{level = 10 : i32, message = "bqk,bkd->bqd"}> : () -> ()
    %cst_80 = arith.constant dense<0.000000e+00> : vector<2x8x16xf32>
    %120 = tpu.matmul %119, %107, %cst_80 {dimension_numbers = #tpu.dot_dimension_numbers<[2], [1], [1], [2], [0, 0, 0, 1, 1, 2], [0], [0]>} : vector<2x8x8xbf16>, vector<2x8x16xbf16>, vector<2x8x16xf32> -> vector<2x8x16xf32>
    "tpu.trace_stop"() : () -> ()
    %121 = tpu.reciprocal %118 {approx = true} : vector<2x8x1xf32> -> vector<2x8x1xf32>
    %122 = vector.broadcast %121 : vector<2x8x1xf32> to vector<2x8x16xf32>
    %123 = arith.mulf %120, %122 : vector<2x8x16xf32>
    %124 = vector.shape_cast %123 : vector<2x8x16xf32> to vector<16x16xf32>
    %125 = arith.truncf %124 : vector<16x16xf32> to vector<16x16xbf16>
    %c0_81 = arith.constant 0 : index
    %c1_82 = arith.constant 1 : index
    %c0_83 = arith.constant 0 : index
    %c0_84 = arith.constant 0 : index
    %126 = vector.load %arg10[%c0_81, %c1_82, %c0_83, %c0_84] : memref<2x2x16x32xbf16, #tpu.memory_space<vmem>>, vector<1x1x16x32xbf16>
    %127 = vector.shape_cast %126 : vector<1x1x16x32xbf16> to vector<16x32xbf16>
    %cst_85 = arith.constant dense<0.000000e+00> : vector<16x32xf32>
    %128 = tpu.matmul %125, %127, %cst_85 {dimension_numbers = #tpu.dot_dimension_numbers<[1], [0], [0], [1], [0, 0, 1, 1], [], []>} : vector<16x16xbf16>, vector<16x32xbf16>, vector<16x32xf32> -> vector<16x32xf32>
    %129 = arith.addf %80, %128 : vector<16x32xf32>
    %c0_86 = arith.constant 0 : index
    %c0_87 = arith.constant 0 : index
    %c0_88 = arith.constant 0 : index
    %130 = vector.load %arg11[%c0_86, %c0_87, %c0_88] : memref<2x1x32xf32, #tpu.memory_space<vmem>>, vector<1x1x32xf32>
    %131 = vector.shape_cast %130 : vector<1x1x32xf32> to vector<1x32xf32>
    %132 = vector.broadcast %131 : vector<1x32xf32> to vector<16x32xf32>
    %133 = arith.addf %129, %132 : vector<16x32xf32>
    %134 = arith.addf %133, %26 : vector<16x32xf32>
    %c0_89 = arith.constant 0 : index
    %c0_90 = arith.constant 0 : index
    %c0_91 = arith.constant 0 : index
    %135 = vector.load %arg12[%c0_89, %c0_90, %c0_91] : memref<2x1x32xf32, #tpu.memory_space<vmem>>, vector<1x1x32xf32>
    %136 = vector.shape_cast %135 : vector<1x1x32xf32> to vector<1x32xf32>
    %c0_92 = arith.constant 0 : index
    %c0_93 = arith.constant 0 : index
    %c0_94 = arith.constant 0 : index
    %137 = vector.load %arg13[%c0_92, %c0_93, %c0_94] : memref<2x1x32xf32, #tpu.memory_space<vmem>>, vector<1x1x32xf32>
    %138 = vector.shape_cast %137 : vector<1x1x32xf32> to vector<1x32xf32>
    %cst_95 = arith.constant dense<0.000000e+00> : vector<16xf32>
    %139 = vector.multi_reduction <add>, %134, %cst_95 [1] : vector<16x32xf32> to vector<16xf32>
    %140 = vector.shape_cast %139 : vector<16xf32> to vector<16x1xf32>
    %cst_96 = arith.constant 3.200000e+01 : f32
    %141 = vector.broadcast %cst_96 : f32 to vector<16x1xf32>
    %142 = arith.divf %140, %141 : vector<16x1xf32>
    %143 = vector.broadcast %142 : vector<16x1xf32> to vector<16x32xf32>
    %144 = arith.subf %134, %143 : vector<16x32xf32>
    %145 = vector.broadcast %142 : vector<16x1xf32> to vector<16x32xf32>
    %146 = arith.subf %134, %145 : vector<16x32xf32>
    %147 = arith.mulf %144, %146 : vector<16x32xf32>
    %cst_97 = arith.constant dense<0.000000e+00> : vector<16xf32>
    %148 = vector.multi_reduction <add>, %147, %cst_97 [1] : vector<16x32xf32> to vector<16xf32>
    %149 = vector.shape_cast %148 : vector<16xf32> to vector<16x1xf32>
    %cst_98 = arith.constant 3.200000e+01 : f32
    %150 = vector.broadcast %cst_98 : f32 to vector<16x1xf32>
    %151 = arith.divf %149, %150 : vector<16x1xf32>
    %152 = vector.broadcast %142 : vector<16x1xf32> to vector<16x32xf32>
    %153 = arith.subf %134, %152 : vector<16x32xf32>
    %cst_99 = arith.constant 9.99999996E-13 : f32
    %154 = vector.broadcast %cst_99 : f32 to vector<16x1xf32>
    %155 = arith.addf %151, %154 : vector<16x1xf32>
    %156 = math.rsqrt %155 : vector<16x1xf32>
    %157 = vector.broadcast %156 : vector<16x1xf32> to vector<16x32xf32>
    %158 = arith.mulf %153, %157 : vector<16x32xf32>
    %159 = vector.broadcast %136 : vector<1x32xf32> to vector<16x32xf32>
    %160 = arith.mulf %158, %159 : vector<16x32xf32>
    %161 = vector.broadcast %138 : vector<1x32xf32> to vector<16x32xf32>
    %162 = arith.addf %160, %161 : vector<16x32xf32>
    %163 = arith.truncf %162 : vector<16x32xf32> to vector<16x32xbf16>
    %c0_100 = arith.constant 0 : index
    %c0_101 = arith.constant 0 : index
    %c0_102 = arith.constant 0 : index
    %164 = vector.load %arg14[%c0_100, %c0_101, %c0_102] : memref<2x32x64xbf16, #tpu.memory_space<vmem>>, vector<1x32x64xbf16>
    %165 = vector.shape_cast %164 : vector<1x32x64xbf16> to vector<32x64xbf16>
    %cst_103 = arith.constant dense<0.000000e+00> : vector<16x64xf32>
    %166 = tpu.matmul %163, %165, %cst_103 {dimension_numbers = #tpu.dot_dimension_numbers<[1], [0], [0], [1], [0, 0, 1, 1], [], []>} : vector<16x32xbf16>, vector<32x64xbf16>, vector<16x64xf32> -> vector<16x64xf32>
    %c0_104 = arith.constant 0 : index
    %c0_105 = arith.constant 0 : index
    %c0_106 = arith.constant 0 : index
    %167 = vector.load %arg15[%c0_104, %c0_105, %c0_106] : memref<2x1x64xf32, #tpu.memory_space<vmem>>, vector<1x1x64xf32>
    %168 = vector.shape_cast %167 : vector<1x1x64xf32> to vector<1x64xf32>
    %169 = vector.broadcast %168 : vector<1x64xf32> to vector<16x64xf32>
    %170 = arith.addf %166, %169 : vector<16x64xf32>
    %cst_107 = arith.constant 5.000000e-01 : f32
    %171 = vector.broadcast %cst_107 : f32 to vector<16x64xf32>
    %172 = arith.mulf %170, %171 : vector<16x64xf32>
    %cst_108 = arith.constant 1.41421354 : f32
    %173 = vector.broadcast %cst_108 : f32 to vector<16x64xf32>
    %174 = arith.divf %170, %173 : vector<16x64xf32>
    %175 = math.erf %174 : vector<16x64xf32>
    %cst_109 = arith.constant 1.000000e+00 : f32
    %176 = vector.broadcast %cst_109 : f32 to vector<16x64xf32>
    %177 = arith.addf %176, %175 : vector<16x64xf32>
    %178 = arith.mulf %172, %177 : vector<16x64xf32>
    %179 = arith.truncf %178 : vector<16x64xf32> to vector<16x64xbf16>
    %c0_110 = arith.constant 0 : index
    %c0_111 = arith.constant 0 : index
    %c0_112 = arith.constant 0 : index
    %180 = vector.load %arg16[%c0_110, %c0_111, %c0_112] : memref<2x64x32xbf16, #tpu.memory_space<vmem>>, vector<1x64x32xbf16>
    %181 = vector.shape_cast %180 : vector<1x64x32xbf16> to vector<64x32xbf16>
    %cst_113 = arith.constant dense<0.000000e+00> : vector<16x32xf32>
    %182 = tpu.matmul %179, %181, %cst_113 {dimension_numbers = #tpu.dot_dimension_numbers<[1], [0], [0], [1], [0, 0, 1, 1], [], []>} : vector<16x64xbf16>, vector<64x32xbf16>, vector<16x32xf32> -> vector<16x32xf32>
    %c0_114 = arith.constant 0 : index
    %c0_115 = arith.constant 0 : index
    %c0_116 = arith.constant 0 : index
    %183 = vector.load %arg17[%c0_114, %c0_115, %c0_116] : memref<2x1x32xf32, #tpu.memory_space<vmem>>, vector<1x1x32xf32>
    %184 = vector.shape_cast %183 : vector<1x1x32xf32> to vector<1x32xf32>
    %185 = vector.broadcast %184 : vector<1x32xf32> to vector<16x32xf32>
    %186 = arith.addf %182, %185 : vector<16x32xf32>
    %187 = arith.addf %186, %162 : vector<16x32xf32>
    %c0_117 = arith.constant 0 : index
    %c0_118 = arith.constant 0 : index
    %c0_119 = arith.constant 0 : index
    %188 = vector.load %arg18[%c0_117, %c0_118, %c0_119] : memref<2x1x32xf32, #tpu.memory_space<vmem>>, vector<1x1x32xf32>
    %189 = vector.shape_cast %188 : vector<1x1x32xf32> to vector<1x32xf32>
    %c0_120 = arith.constant 0 : index
    %c0_121 = arith.constant 0 : index
    %c0_122 = arith.constant 0 : index
    %190 = vector.load %arg19[%c0_120, %c0_121, %c0_122] : memref<2x1x32xf32, #tpu.memory_space<vmem>>, vector<1x1x32xf32>
    %191 = vector.shape_cast %190 : vector<1x1x32xf32> to vector<1x32xf32>
    %cst_123 = arith.constant dense<0.000000e+00> : vector<16xf32>
    %192 = vector.multi_reduction <add>, %187, %cst_123 [1] : vector<16x32xf32> to vector<16xf32>
    %193 = vector.shape_cast %192 : vector<16xf32> to vector<16x1xf32>
    %cst_124 = arith.constant 3.200000e+01 : f32
    %194 = vector.broadcast %cst_124 : f32 to vector<16x1xf32>
    %195 = arith.divf %193, %194 : vector<16x1xf32>
    %196 = vector.broadcast %195 : vector<16x1xf32> to vector<16x32xf32>
    %197 = arith.subf %187, %196 : vector<16x32xf32>
    %198 = vector.broadcast %195 : vector<16x1xf32> to vector<16x32xf32>
    %199 = arith.subf %187, %198 : vector<16x32xf32>
    %200 = arith.mulf %197, %199 : vector<16x32xf32>
    %cst_125 = arith.constant dense<0.000000e+00> : vector<16xf32>
    %201 = vector.multi_reduction <add>, %200, %cst_125 [1] : vector<16x32xf32> to vector<16xf32>
    %202 = vector.shape_cast %201 : vector<16xf32> to vector<16x1xf32>
    %cst_126 = arith.constant 3.200000e+01 : f32
    %203 = vector.broadcast %cst_126 : f32 to vector<16x1xf32>
    %204 = arith.divf %202, %203 : vector<16x1xf32>
    %205 = vector.broadcast %195 : vector<16x1xf32> to vector<16x32xf32>
    %206 = arith.subf %187, %205 : vector<16x32xf32>
    %cst_127 = arith.constant 9.99999996E-13 : f32
    %207 = vector.broadcast %cst_127 : f32 to vector<16x1xf32>
    %208 = arith.addf %204, %207 : vector<16x1xf32>
    %209 = math.rsqrt %208 : vector<16x1xf32>
    %210 = vector.broadcast %209 : vector<16x1xf32> to vector<16x32xf32>
    %211 = arith.mulf %206, %210 : vector<16x32xf32>
    %212 = vector.broadcast %189 : vector<1x32xf32> to vector<16x32xf32>
    %213 = arith.mulf %211, %212 : vector<16x32xf32>
    %214 = vector.broadcast %191 : vector<1x32xf32> to vector<16x32xf32>
    %215 = arith.addf %213, %214 : vector<16x32xf32>
    %216 = arith.truncf %215 : vector<16x32xf32> to vector<16x32xbf16>
    %cst_128 = arith.constant 0.000000e+00 : f32
    %217 = vector.broadcast %cst_128 : f32 to vector<16x32xf32>
    %c1_129 = arith.constant 1 : index
    %c0_130 = arith.constant 0 : index
    %c0_131 = arith.constant 0 : index
    %c0_132 = arith.constant 0 : index
    %218 = vector.load %arg4[%c1_129, %c0_130, %c0_131, %c0_132] : memref<2x2x32x16xbf16, #tpu.memory_space<vmem>>, vector<1x1x32x16xbf16>
    %219 = vector.shape_cast %218 : vector<1x1x32x16xbf16> to vector<32x16xbf16>
    %cst_133 = arith.constant dense<0.000000e+00> : vector<16x16xf32>
    %220 = tpu.matmul %216, %219, %cst_133 {dimension_numbers = #tpu.dot_dimension_numbers<[1], [0], [0], [1], [0, 0, 1, 1], [], []>} : vector<16x32xbf16>, vector<32x16xbf16>, vector<16x16xf32> -> vector<16x16xf32>
    %c1_134 = arith.constant 1 : index
    %c0_135 = arith.constant 0 : index
    %c0_136 = arith.constant 0 : index
    %c0_137 = arith.constant 0 : index
    %221 = vector.load %arg5[%c1_134, %c0_135, %c0_136, %c0_137] : memref<2x2x1x16xf32, #tpu.memory_space<vmem>>, vector<1x1x1x16xf32>
    %222 = vector.shape_cast %221 : vector<1x1x1x16xf32> to vector<1x16xf32>
    %223 = vector.broadcast %222 : vector<1x16xf32> to vector<16x16xf32>
    %224 = arith.addf %220, %223 : vector<16x16xf32>
    %c1_138 = arith.constant 1 : index
    %c0_139 = arith.constant 0 : index
    %c0_140 = arith.constant 0 : index
    %c0_141 = arith.constant 0 : index
    %225 = vector.load %arg6[%c1_138, %c0_139, %c0_140, %c0_141] : memref<2x2x32x16xbf16, #tpu.memory_space<vmem>>, vector<1x1x32x16xbf16>
    %226 = vector.shape_cast %225 : vector<1x1x32x16xbf16> to vector<32x16xbf16>
    %cst_142 = arith.constant dense<0.000000e+00> : vector<16x16xf32>
    %227 = tpu.matmul %216, %226, %cst_142 {dimension_numbers = #tpu.dot_dimension_numbers<[1], [0], [0], [1], [0, 0, 1, 1], [], []>} : vector<16x32xbf16>, vector<32x16xbf16>, vector<16x16xf32> -> vector<16x16xf32>
    %c1_143 = arith.constant 1 : index
    %c0_144 = arith.constant 0 : index
    %c0_145 = arith.constant 0 : index
    %c0_146 = arith.constant 0 : index
    %228 = vector.load %arg7[%c1_143, %c0_144, %c0_145, %c0_146] : memref<2x2x1x16xf32, #tpu.memory_space<vmem>>, vector<1x1x1x16xf32>
    %229 = vector.shape_cast %228 : vector<1x1x1x16xf32> to vector<1x16xf32>
    %230 = vector.broadcast %229 : vector<1x16xf32> to vector<16x16xf32>
    %231 = arith.addf %227, %230 : vector<16x16xf32>
    %c1_147 = arith.constant 1 : index
    %c0_148 = arith.constant 0 : index
    %c0_149 = arith.constant 0 : index
    %c0_150 = arith.constant 0 : index
    %232 = vector.load %arg8[%c1_147, %c0_148, %c0_149, %c0_150] : memref<2x2x32x16xbf16, #tpu.memory_space<vmem>>, vector<1x1x32x16xbf16>
    %233 = vector.shape_cast %232 : vector<1x1x32x16xbf16> to vector<32x16xbf16>
    %cst_151 = arith.constant dense<0.000000e+00> : vector<16x16xf32>
    %234 = tpu.matmul %216, %233, %cst_151 {dimension_numbers = #tpu.dot_dimension_numbers<[1], [0], [0], [1], [0, 0, 1, 1], [], []>} : vector<16x32xbf16>, vector<32x16xbf16>, vector<16x16xf32> -> vector<16x16xf32>
    %c1_152 = arith.constant 1 : index
    %c0_153 = arith.constant 0 : index
    %c0_154 = arith.constant 0 : index
    %c0_155 = arith.constant 0 : index
    %235 = vector.load %arg9[%c1_152, %c0_153, %c0_154, %c0_155] : memref<2x2x1x16xf32, #tpu.memory_space<vmem>>, vector<1x1x1x16xf32>
    %236 = vector.shape_cast %235 : vector<1x1x1x16xf32> to vector<1x16xf32>
    %237 = vector.broadcast %236 : vector<1x16xf32> to vector<16x16xf32>
    %238 = arith.addf %234, %237 : vector<16x16xf32>
    %239 = vector.shape_cast %224 : vector<16x16xf32> to vector<2x8x16xf32>
    %240 = arith.truncf %239 : vector<2x8x16xf32> to vector<2x8x16xbf16>
    %241 = vector.shape_cast %231 : vector<16x16xf32> to vector<2x8x16xf32>
    %242 = arith.truncf %241 : vector<2x8x16xf32> to vector<2x8x16xbf16>
    %243 = vector.shape_cast %238 : vector<16x16xf32> to vector<2x8x16xf32>
    %244 = arith.truncf %243 : vector<2x8x16xf32> to vector<2x8x16xbf16>
    "tpu.trace_start"() <{level = 10 : i32, message = "bqd,bkd->bqk"}> : () -> ()
    %cst_156 = arith.constant dense<0.000000e+00> : vector<2x8x8xf32>
    %245 = tpu.matmul %240, %242, %cst_156 {dimension_numbers = #tpu.dot_dimension_numbers<[2], [2], [1], [1], [0, 0, 0, 1, 1, 1], [0], [0]>} : vector<2x8x16xbf16>, vector<2x8x16xbf16>, vector<2x8x8xf32> -> vector<2x8x8xf32>
    "tpu.trace_stop"() : () -> ()
    %cst_157 = arith.constant 2.500000e-01 : f32
    %246 = vector.broadcast %cst_157 : f32 to vector<2x8x8xf32>
    %247 = arith.mulf %245, %246 : vector<2x8x8xf32>
    %248 = arith.addf %247, %29 : vector<2x8x8xf32>
    %cst_158 = arith.constant dense<0xFF800000> : vector<2x8xf32>
    %249 = vector.multi_reduction <maximumf>, %248, %cst_158 [2] : vector<2x8x8xf32> to vector<2x8xf32>
    %250 = vector.shape_cast %249 : vector<2x8xf32> to vector<2x8x1xf32>
    %251 = vector.broadcast %250 : vector<2x8x1xf32> to vector<2x8x8xf32>
    %252 = arith.subf %248, %251 : vector<2x8x8xf32>
    %253 = math.exp %252 : vector<2x8x8xf32>
    %cst_159 = arith.constant dense<0.000000e+00> : vector<2x8xf32>
    %254 = vector.multi_reduction <add>, %253, %cst_159 [2] : vector<2x8x8xf32> to vector<2x8xf32>
    %255 = vector.shape_cast %254 : vector<2x8xf32> to vector<2x8x1xf32>
    %256 = arith.truncf %253 : vector<2x8x8xf32> to vector<2x8x8xbf16>
    "tpu.trace_start"() <{level = 10 : i32, message = "bqk,bkd->bqd"}> : () -> ()
    %cst_160 = arith.constant dense<0.000000e+00> : vector<2x8x16xf32>
    %257 = tpu.matmul %256, %244, %cst_160 {dimension_numbers = #tpu.dot_dimension_numbers<[2], [1], [1], [2], [0, 0, 0, 1, 1, 2], [0], [0]>} : vector<2x8x8xbf16>, vector<2x8x16xbf16>, vector<2x8x16xf32> -> vector<2x8x16xf32>
    "tpu.trace_stop"() : () -> ()
    %258 = tpu.reciprocal %255 {approx = true} : vector<2x8x1xf32> -> vector<2x8x1xf32>
    %259 = vector.broadcast %258 : vector<2x8x1xf32> to vector<2x8x16xf32>
    %260 = arith.mulf %257, %259 : vector<2x8x16xf32>
    %261 = vector.shape_cast %260 : vector<2x8x16xf32> to vector<16x16xf32>
    %262 = arith.truncf %261 : vector<16x16xf32> to vector<16x16xbf16>
    %c1_161 = arith.constant 1 : index
    %c0_162 = arith.constant 0 : index
    %c0_163 = arith.constant 0 : index
    %c0_164 = arith.constant 0 : index
    %263 = vector.load %arg10[%c1_161, %c0_162, %c0_163, %c0_164] : memref<2x2x16x32xbf16, #tpu.memory_space<vmem>>, vector<1x1x16x32xbf16>
    %264 = vector.shape_cast %263 : vector<1x1x16x32xbf16> to vector<16x32xbf16>
    %cst_165 = arith.constant dense<0.000000e+00> : vector<16x32xf32>
    %265 = tpu.matmul %262, %264, %cst_165 {dimension_numbers = #tpu.dot_dimension_numbers<[1], [0], [0], [1], [0, 0, 1, 1], [], []>} : vector<16x16xbf16>, vector<16x32xbf16>, vector<16x32xf32> -> vector<16x32xf32>
    %266 = arith.addf %217, %265 : vector<16x32xf32>
    %c1_166 = arith.constant 1 : index
    %c1_167 = arith.constant 1 : index
    %c0_168 = arith.constant 0 : index
    %c0_169 = arith.constant 0 : index
    %267 = vector.load %arg4[%c1_166, %c1_167, %c0_168, %c0_169] : memref<2x2x32x16xbf16, #tpu.memory_space<vmem>>, vector<1x1x32x16xbf16>
    %268 = vector.shape_cast %267 : vector<1x1x32x16xbf16> to vector<32x16xbf16>
    %cst_170 = arith.constant dense<0.000000e+00> : vector<16x16xf32>
    %269 = tpu.matmul %216, %268, %cst_170 {dimension_numbers = #tpu.dot_dimension_numbers<[1], [0], [0], [1], [0, 0, 1, 1], [], []>} : vector<16x32xbf16>, vector<32x16xbf16>, vector<16x16xf32> -> vector<16x16xf32>
    %c1_171 = arith.constant 1 : index
    %c1_172 = arith.constant 1 : index
    %c0_173 = arith.constant 0 : index
    %c0_174 = arith.constant 0 : index
    %270 = vector.load %arg5[%c1_171, %c1_172, %c0_173, %c0_174] : memref<2x2x1x16xf32, #tpu.memory_space<vmem>>, vector<1x1x1x16xf32>
    %271 = vector.shape_cast %270 : vector<1x1x1x16xf32> to vector<1x16xf32>
    %272 = vector.broadcast %271 : vector<1x16xf32> to vector<16x16xf32>
    %273 = arith.addf %269, %272 : vector<16x16xf32>
    %c1_175 = arith.constant 1 : index
    %c1_176 = arith.constant 1 : index
    %c0_177 = arith.constant 0 : index
    %c0_178 = arith.constant 0 : index
    %274 = vector.load %arg6[%c1_175, %c1_176, %c0_177, %c0_178] : memref<2x2x32x16xbf16, #tpu.memory_space<vmem>>, vector<1x1x32x16xbf16>
    %275 = vector.shape_cast %274 : vector<1x1x32x16xbf16> to vector<32x16xbf16>
    %cst_179 = arith.constant dense<0.000000e+00> : vector<16x16xf32>
    %276 = tpu.matmul %216, %275, %cst_179 {dimension_numbers = #tpu.dot_dimension_numbers<[1], [0], [0], [1], [0, 0, 1, 1], [], []>} : vector<16x32xbf16>, vector<32x16xbf16>, vector<16x16xf32> -> vector<16x16xf32>
    %c1_180 = arith.constant 1 : index
    %c1_181 = arith.constant 1 : index
    %c0_182 = arith.constant 0 : index
    %c0_183 = arith.constant 0 : index
    %277 = vector.load %arg7[%c1_180, %c1_181, %c0_182, %c0_183] : memref<2x2x1x16xf32, #tpu.memory_space<vmem>>, vector<1x1x1x16xf32>
    %278 = vector.shape_cast %277 : vector<1x1x1x16xf32> to vector<1x16xf32>
    %279 = vector.broadcast %278 : vector<1x16xf32> to vector<16x16xf32>
    %280 = arith.addf %276, %279 : vector<16x16xf32>
    %c1_184 = arith.constant 1 : index
    %c1_185 = arith.constant 1 : index
    %c0_186 = arith.constant 0 : index
    %c0_187 = arith.constant 0 : index
    %281 = vector.load %arg8[%c1_184, %c1_185, %c0_186, %c0_187] : memref<2x2x32x16xbf16, #tpu.memory_space<vmem>>, vector<1x1x32x16xbf16>
    %282 = vector.shape_cast %281 : vector<1x1x32x16xbf16> to vector<32x16xbf16>
    %cst_188 = arith.constant dense<0.000000e+00> : vector<16x16xf32>
    %283 = tpu.matmul %216, %282, %cst_188 {dimension_numbers = #tpu.dot_dimension_numbers<[1], [0], [0], [1], [0, 0, 1, 1], [], []>} : vector<16x32xbf16>, vector<32x16xbf16>, vector<16x16xf32> -> vector<16x16xf32>
    %c1_189 = arith.constant 1 : index
    %c1_190 = arith.constant 1 : index
    %c0_191 = arith.constant 0 : index
    %c0_192 = arith.constant 0 : index
    %284 = vector.load %arg9[%c1_189, %c1_190, %c0_191, %c0_192] : memref<2x2x1x16xf32, #tpu.memory_space<vmem>>, vector<1x1x1x16xf32>
    %285 = vector.shape_cast %284 : vector<1x1x1x16xf32> to vector<1x16xf32>
    %286 = vector.broadcast %285 : vector<1x16xf32> to vector<16x16xf32>
    %287 = arith.addf %283, %286 : vector<16x16xf32>
    %288 = vector.shape_cast %273 : vector<16x16xf32> to vector<2x8x16xf32>
    %289 = arith.truncf %288 : vector<2x8x16xf32> to vector<2x8x16xbf16>
    %290 = vector.shape_cast %280 : vector<16x16xf32> to vector<2x8x16xf32>
    %291 = arith.truncf %290 : vector<2x8x16xf32> to vector<2x8x16xbf16>
    %292 = vector.shape_cast %287 : vector<16x16xf32> to vector<2x8x16xf32>
    %293 = arith.truncf %292 : vector<2x8x16xf32> to vector<2x8x16xbf16>
    "tpu.trace_start"() <{level = 10 : i32, message = "bqd,bkd->bqk"}> : () -> ()
    %cst_193 = arith.constant dense<0.000000e+00> : vector<2x8x8xf32>
    %294 = tpu.matmul %289, %291, %cst_193 {dimension_numbers = #tpu.dot_dimension_numbers<[2], [2], [1], [1], [0, 0, 0, 1, 1, 1], [0], [0]>} : vector<2x8x16xbf16>, vector<2x8x16xbf16>, vector<2x8x8xf32> -> vector<2x8x8xf32>
    "tpu.trace_stop"() : () -> ()
    %cst_194 = arith.constant 2.500000e-01 : f32
    %295 = vector.broadcast %cst_194 : f32 to vector<2x8x8xf32>
    %296 = arith.mulf %294, %295 : vector<2x8x8xf32>
    %297 = arith.addf %296, %29 : vector<2x8x8xf32>
    %cst_195 = arith.constant dense<0xFF800000> : vector<2x8xf32>
    %298 = vector.multi_reduction <maximumf>, %297, %cst_195 [2] : vector<2x8x8xf32> to vector<2x8xf32>
    %299 = vector.shape_cast %298 : vector<2x8xf32> to vector<2x8x1xf32>
    %300 = vector.broadcast %299 : vector<2x8x1xf32> to vector<2x8x8xf32>
    %301 = arith.subf %297, %300 : vector<2x8x8xf32>
    %302 = math.exp %301 : vector<2x8x8xf32>
    %cst_196 = arith.constant dense<0.000000e+00> : vector<2x8xf32>
    %303 = vector.multi_reduction <add>, %302, %cst_196 [2] : vector<2x8x8xf32> to vector<2x8xf32>
    %304 = vector.shape_cast %303 : vector<2x8xf32> to vector<2x8x1xf32>
    %305 = arith.truncf %302 : vector<2x8x8xf32> to vector<2x8x8xbf16>
    "tpu.trace_start"() <{level = 10 : i32, message = "bqk,bkd->bqd"}> : () -> ()
    %cst_197 = arith.constant dense<0.000000e+00> : vector<2x8x16xf32>
    %306 = tpu.matmul %305, %293, %cst_197 {dimension_numbers = #tpu.dot_dimension_numbers<[2], [1], [1], [2], [0, 0, 0, 1, 1, 2], [0], [0]>} : vector<2x8x8xbf16>, vector<2x8x16xbf16>, vector<2x8x16xf32> -> vector<2x8x16xf32>
    "tpu.trace_stop"() : () -> ()
    %307 = tpu.reciprocal %304 {approx = true} : vector<2x8x1xf32> -> vector<2x8x1xf32>
    %308 = vector.broadcast %307 : vector<2x8x1xf32> to vector<2x8x16xf32>
    %309 = arith.mulf %306, %308 : vector<2x8x16xf32>
    %310 = vector.shape_cast %309 : vector<2x8x16xf32> to vector<16x16xf32>
    %311 = arith.truncf %310 : vector<16x16xf32> to vector<16x16xbf16>
    %c1_198 = arith.constant 1 : index
    %c1_199 = arith.constant 1 : index
    %c0_200 = arith.constant 0 : index
    %c0_201 = arith.constant 0 : index
    %312 = vector.load %arg10[%c1_198, %c1_199, %c0_200, %c0_201] : memref<2x2x16x32xbf16, #tpu.memory_space<vmem>>, vector<1x1x16x32xbf16>
    %313 = vector.shape_cast %312 : vector<1x1x16x32xbf16> to vector<16x32xbf16>
    %cst_202 = arith.constant dense<0.000000e+00> : vector<16x32xf32>
    %314 = tpu.matmul %311, %313, %cst_202 {dimension_numbers = #tpu.dot_dimension_numbers<[1], [0], [0], [1], [0, 0, 1, 1], [], []>} : vector<16x16xbf16>, vector<16x32xbf16>, vector<16x32xf32> -> vector<16x32xf32>
    %315 = arith.addf %266, %314 : vector<16x32xf32>
    %c1_203 = arith.constant 1 : index
    %c0_204 = arith.constant 0 : index
    %c0_205 = arith.constant 0 : index
    %316 = vector.load %arg11[%c1_203, %c0_204, %c0_205] : memref<2x1x32xf32, #tpu.memory_space<vmem>>, vector<1x1x32xf32>
    %317 = vector.shape_cast %316 : vector<1x1x32xf32> to vector<1x32xf32>
    %318 = vector.broadcast %317 : vector<1x32xf32> to vector<16x32xf32>
    %319 = arith.addf %315, %318 : vector<16x32xf32>
    %320 = arith.addf %319, %215 : vector<16x32xf32>
    %c1_206 = arith.constant 1 : index
    %c0_207 = arith.constant 0 : index
    %c0_208 = arith.constant 0 : index
    %321 = vector.load %arg12[%c1_206, %c0_207, %c0_208] : memref<2x1x32xf32, #tpu.memory_space<vmem>>, vector<1x1x32xf32>
    %322 = vector.shape_cast %321 : vector<1x1x32xf32> to vector<1x32xf32>
    %c1_209 = arith.constant 1 : index
    %c0_210 = arith.constant 0 : index
    %c0_211 = arith.constant 0 : index
    %323 = vector.load %arg13[%c1_209, %c0_210, %c0_211] : memref<2x1x32xf32, #tpu.memory_space<vmem>>, vector<1x1x32xf32>
    %324 = vector.shape_cast %323 : vector<1x1x32xf32> to vector<1x32xf32>
    %cst_212 = arith.constant dense<0.000000e+00> : vector<16xf32>
    %325 = vector.multi_reduction <add>, %320, %cst_212 [1] : vector<16x32xf32> to vector<16xf32>
    %326 = vector.shape_cast %325 : vector<16xf32> to vector<16x1xf32>
    %cst_213 = arith.constant 3.200000e+01 : f32
    %327 = vector.broadcast %cst_213 : f32 to vector<16x1xf32>
    %328 = arith.divf %326, %327 : vector<16x1xf32>
    %329 = vector.broadcast %328 : vector<16x1xf32> to vector<16x32xf32>
    %330 = arith.subf %320, %329 : vector<16x32xf32>
    %331 = vector.broadcast %328 : vector<16x1xf32> to vector<16x32xf32>
    %332 = arith.subf %320, %331 : vector<16x32xf32>
    %333 = arith.mulf %330, %332 : vector<16x32xf32>
    %cst_214 = arith.constant dense<0.000000e+00> : vector<16xf32>
    %334 = vector.multi_reduction <add>, %333, %cst_214 [1] : vector<16x32xf32> to vector<16xf32>
    %335 = vector.shape_cast %334 : vector<16xf32> to vector<16x1xf32>
    %cst_215 = arith.constant 3.200000e+01 : f32
    %336 = vector.broadcast %cst_215 : f32 to vector<16x1xf32>
    %337 = arith.divf %335, %336 : vector<16x1xf32>
    %338 = vector.broadcast %328 : vector<16x1xf32> to vector<16x32xf32>
    %339 = arith.subf %320, %338 : vector<16x32xf32>
    %cst_216 = arith.constant 9.99999996E-13 : f32
    %340 = vector.broadcast %cst_216 : f32 to vector<16x1xf32>
    %341 = arith.addf %337, %340 : vector<16x1xf32>
    %342 = math.rsqrt %341 : vector<16x1xf32>
    %343 = vector.broadcast %342 : vector<16x1xf32> to vector<16x32xf32>
    %344 = arith.mulf %339, %343 : vector<16x32xf32>
    %345 = vector.broadcast %322 : vector<1x32xf32> to vector<16x32xf32>
    %346 = arith.mulf %344, %345 : vector<16x32xf32>
    %347 = vector.broadcast %324 : vector<1x32xf32> to vector<16x32xf32>
    %348 = arith.addf %346, %347 : vector<16x32xf32>
    %349 = arith.truncf %348 : vector<16x32xf32> to vector<16x32xbf16>
    %c1_217 = arith.constant 1 : index
    %c0_218 = arith.constant 0 : index
    %c0_219 = arith.constant 0 : index
    %350 = vector.load %arg14[%c1_217, %c0_218, %c0_219] : memref<2x32x64xbf16, #tpu.memory_space<vmem>>, vector<1x32x64xbf16>
    %351 = vector.shape_cast %350 : vector<1x32x64xbf16> to vector<32x64xbf16>
    %cst_220 = arith.constant dense<0.000000e+00> : vector<16x64xf32>
    %352 = tpu.matmul %349, %351, %cst_220 {dimension_numbers = #tpu.dot_dimension_numbers<[1], [0], [0], [1], [0, 0, 1, 1], [], []>} : vector<16x32xbf16>, vector<32x64xbf16>, vector<16x64xf32> -> vector<16x64xf32>
    %c1_221 = arith.constant 1 : index
    %c0_222 = arith.constant 0 : index
    %c0_223 = arith.constant 0 : index
    %353 = vector.load %arg15[%c1_221, %c0_222, %c0_223] : memref<2x1x64xf32, #tpu.memory_space<vmem>>, vector<1x1x64xf32>
    %354 = vector.shape_cast %353 : vector<1x1x64xf32> to vector<1x64xf32>
    %355 = vector.broadcast %354 : vector<1x64xf32> to vector<16x64xf32>
    %356 = arith.addf %352, %355 : vector<16x64xf32>
    %cst_224 = arith.constant 5.000000e-01 : f32
    %357 = vector.broadcast %cst_224 : f32 to vector<16x64xf32>
    %358 = arith.mulf %356, %357 : vector<16x64xf32>
    %cst_225 = arith.constant 1.41421354 : f32
    %359 = vector.broadcast %cst_225 : f32 to vector<16x64xf32>
    %360 = arith.divf %356, %359 : vector<16x64xf32>
    %361 = math.erf %360 : vector<16x64xf32>
    %cst_226 = arith.constant 1.000000e+00 : f32
    %362 = vector.broadcast %cst_226 : f32 to vector<16x64xf32>
    %363 = arith.addf %362, %361 : vector<16x64xf32>
    %364 = arith.mulf %358, %363 : vector<16x64xf32>
    %365 = arith.truncf %364 : vector<16x64xf32> to vector<16x64xbf16>
    %c1_227 = arith.constant 1 : index
    %c0_228 = arith.constant 0 : index
    %c0_229 = arith.constant 0 : index
    %366 = vector.load %arg16[%c1_227, %c0_228, %c0_229] : memref<2x64x32xbf16, #tpu.memory_space<vmem>>, vector<1x64x32xbf16>
    %367 = vector.shape_cast %366 : vector<1x64x32xbf16> to vector<64x32xbf16>
    %cst_230 = arith.constant dense<0.000000e+00> : vector<16x32xf32>
    %368 = tpu.matmul %365, %367, %cst_230 {dimension_numbers = #tpu.dot_dimension_numbers<[1], [0], [0], [1], [0, 0, 1, 1], [], []>} : vector<16x64xbf16>, vector<64x32xbf16>, vector<16x32xf32> -> vector<16x32xf32>
    %c1_231 = arith.constant 1 : index
    %c0_232 = arith.constant 0 : index
    %c0_233 = arith.constant 0 : index
    %369 = vector.load %arg17[%c1_231, %c0_232, %c0_233] : memref<2x1x32xf32, #tpu.memory_space<vmem>>, vector<1x1x32xf32>
    %370 = vector.shape_cast %369 : vector<1x1x32xf32> to vector<1x32xf32>
    %371 = vector.broadcast %370 : vector<1x32xf32> to vector<16x32xf32>
    %372 = arith.addf %368, %371 : vector<16x32xf32>
    %373 = arith.addf %372, %348 : vector<16x32xf32>
    %c1_234 = arith.constant 1 : index
    %c0_235 = arith.constant 0 : index
    %c0_236 = arith.constant 0 : index
    %374 = vector.load %arg18[%c1_234, %c0_235, %c0_236] : memref<2x1x32xf32, #tpu.memory_space<vmem>>, vector<1x1x32xf32>
    %375 = vector.shape_cast %374 : vector<1x1x32xf32> to vector<1x32xf32>
    %c1_237 = arith.constant 1 : index
    %c0_238 = arith.constant 0 : index
    %c0_239 = arith.constant 0 : index
    %376 = vector.load %arg19[%c1_237, %c0_238, %c0_239] : memref<2x1x32xf32, #tpu.memory_space<vmem>>, vector<1x1x32xf32>
    %377 = vector.shape_cast %376 : vector<1x1x32xf32> to vector<1x32xf32>
    %cst_240 = arith.constant dense<0.000000e+00> : vector<16xf32>
    %378 = vector.multi_reduction <add>, %373, %cst_240 [1] : vector<16x32xf32> to vector<16xf32>
    %379 = vector.shape_cast %378 : vector<16xf32> to vector<16x1xf32>
    %cst_241 = arith.constant 3.200000e+01 : f32
    %380 = vector.broadcast %cst_241 : f32 to vector<16x1xf32>
    %381 = arith.divf %379, %380 : vector<16x1xf32>
    %382 = vector.broadcast %381 : vector<16x1xf32> to vector<16x32xf32>
    %383 = arith.subf %373, %382 : vector<16x32xf32>
    %384 = vector.broadcast %381 : vector<16x1xf32> to vector<16x32xf32>
    %385 = arith.subf %373, %384 : vector<16x32xf32>
    %386 = arith.mulf %383, %385 : vector<16x32xf32>
    %cst_242 = arith.constant dense<0.000000e+00> : vector<16xf32>
    %387 = vector.multi_reduction <add>, %386, %cst_242 [1] : vector<16x32xf32> to vector<16xf32>
    %388 = vector.shape_cast %387 : vector<16xf32> to vector<16x1xf32>
    %cst_243 = arith.constant 3.200000e+01 : f32
    %389 = vector.broadcast %cst_243 : f32 to vector<16x1xf32>
    %390 = arith.divf %388, %389 : vector<16x1xf32>
    %391 = vector.broadcast %381 : vector<16x1xf32> to vector<16x32xf32>
    %392 = arith.subf %373, %391 : vector<16x32xf32>
    %cst_244 = arith.constant 9.99999996E-13 : f32
    %393 = vector.broadcast %cst_244 : f32 to vector<16x1xf32>
    %394 = arith.addf %390, %393 : vector<16x1xf32>
    %395 = math.rsqrt %394 : vector<16x1xf32>
    %396 = vector.broadcast %395 : vector<16x1xf32> to vector<16x32xf32>
    %397 = arith.mulf %392, %396 : vector<16x32xf32>
    %398 = vector.broadcast %375 : vector<1x32xf32> to vector<16x32xf32>
    %399 = arith.mulf %397, %398 : vector<16x32xf32>
    %400 = vector.broadcast %377 : vector<1x32xf32> to vector<16x32xf32>
    %401 = arith.addf %399, %400 : vector<16x32xf32>
    %c0_245 = arith.constant 0 : index
    %c0_246 = arith.constant 0 : index
    %402 = vector.load %arg20[%c0_245, %c0_246] : memref<16x32xf32, #tpu.memory_space<vmem>>, vector<16x32xf32>
    tpu.vector_store %arg20[%c0_245, %c0_246], %401 {strides = array<i32>} : memref<16x32xf32, #tpu.memory_space<vmem>>, vector<16x32xf32>,
    return
  }
}

</mosaic_0001>

<bundles_post_ra>
// kernel: bert_forward.1
= control target key start
LH: loop header
LB: loop body
LE: loop exit
PB: predicated region body
PF: predicated region fallthrough
CT: control target
= control target key end

     0   :  { %s2744_s0 = inlined_call_operand.vmem [shape: f32[16,32], index: 0, kind: input, shape index: {}]   ;;  %s2745_s1 = inlined_call_operand.vmem [shape: f32[2,1,8], index: 1, kind: input, shape index: {}]   ;;  %s2746_s2 = inlined_call_operand.vmem [shape: f32[1,32], index: 2, kind: input, shape index: {}]   ;;  %s2747_s3 = inlined_call_operand.vmem [shape: f32[1,32], index: 3, kind: input, shape index: {}]   ;;  %s2748_s4 = inlined_call_operand.vmem [shape: bf16[2,2,32,16], index: 4, kind: input, shape index: {}]   ;;  %s2749_s5 = inlined_call_operand.vmem [shape: f32[2,2,1,16], index: 5, kind: input, shape index: {}]   ;;  %s2750_s6 = inlined_call_operand.vmem [shape: bf16[2,2,32,16], index: 6, kind: input, shape index: {}]   ;;  %s2751_s7 = inlined_call_operand.vmem [shape: f32[2,2,1,16], index: 7, kind: input, shape index: {}]   ;;  %s2752_s8 = inlined_call_operand.vmem [shape: bf16[2,2,32,16], index: 8, kind: input, shape index: {}]   ;;  %s2753_s9 = inlined_call_operand.vmem [shape: f32[2,2,1,16], index: 9, kind: input, shape index: {}]   ;;  %s2754_s10 = inlined_call_operand.vmem [shape: bf16[2,2,16,32], index: 10, kind: input, shape index: {}]   ;;  %s2755_s11 = inlined_call_operand.vmem [shape: f32[2,1,32], index: 11, kind: input, shape index: {}]   ;;  %s2756_s12 = inlined_call_operand.vmem [shape: f32[2,1,32], index: 12, kind: input, shape index: {}]   ;;  %s2757_s13 = inlined_call_operand.vmem [shape: f32[2,1,32], index: 13, kind: input, shape index: {}]   ;;  %s2758_s14 = inlined_call_operand.vmem [shape: bf16[2,32,64], index: 14, kind: input, shape index: {}]   ;;  %s2759_s15 = inlined_call_operand.vmem [shape: f32[2,1,64], index: 15, kind: input, shape index: {}]   ;;  %s2760_s16 = inlined_call_operand.vmem [shape: bf16[2,64,32], index: 16, kind: input, shape index: {}]   ;;  %s2761_s17 = inlined_call_operand.vmem [shape: f32[2,1,32], index: 17, kind: input, shape index: {}]   ;;  %s2762_s18 = inlined_call_operand.vmem [shape: f32[2,1,32], index: 18, kind: input, shape index: {}]   ;;  %s2763_s19 = inlined_call_operand.vmem [shape: f32[2,1,32], index: 19, kind: input, shape index: {}]   ;;  %s2764_s20 = inlined_call_operand.hbm [shape: f32[16,32], index: 20, kind: output, shape index: {}]  }
   0x1   :  { %2768 = sst [smem:[#allocation5_spill]] %s2744_s0 }
   0x2   :  { %2769 = sst [smem:[#allocation6_spill]] %s2745_s1 }
   0x3   :  { %2770 = sst [smem:[#allocation7_spill]] %s2746_s2 }
   0x4   :  { %2771 = sst [smem:[#allocation8_spill]] %s2747_s3 }
   0x5   :  { %2772 = sst [smem:[#allocation9_spill]] %s2748_s4 }
   0x6   :  { %s2773_s23 = sld [smem:[#allocation5_spill]]  ;;  %vm71_vm0 = vcmask 261120  }
   0xc   :  { %v67_v0 = vld [vmem:[%s2773_s23] sm:$0xff]  ;;  %v68_v1 = vld [vmem:[%s2773_s23 + $0x8] sm:$0xff] }
   0xd   :  { %v72_v2 = vsel %vm71_vm0, %v67_v0, 0.0  ;;  %v75_v3 = vsel %vm71_vm0, %v68_v1, 0.0 }
   0xe   :  { %73 = vadd.xlane.f32.xlu0 %v72_v2 }
  0x16   :  { %76 = vadd.xlane.f32.xlu0 %v75_v3 }
  0x17   :  { %25 = vsyncpa [#allocation3], 0  ;;  %v2201_v4 = vmov 32.0   ;;  %s2774_s26 = sld [smem:[#allocation9_spill]]  ;;  %v2039_v22 = vld [vmem:[%s2750_s6 + $0x8] sm:$0xff]  ;;  %v2038_v27 = vld [vmem:[%s2750_s6] sm:$0xff] }
  0x18   :  { %2111 = vrcp.f32 %v2201_v4  ;;  %v2041_v23 = vld [vmem:[%s2752_s8 + $0x8] sm:$0xff]  ;;  %205 = vmatpush.bf16.msra.mxu1 %v2039_v22  ;;  %v2040_v28 = vld [vmem:[%s2752_s8] sm:$0xff]  ;;  %s2775_s25 = sld [smem:[#allocation7_spill]]  ;;  %vm253_vm8 = vcmask 130048   ;;  %vm320_vm9 = vcmask 1043456   ;;  %vm296_vm10 = vcmask 64512  }
  0x19   :  { %239 = vmatpush.bf16.msra.mxu2 %v2041_v23  ;;  %s2776_s28 = sld [smem:[#allocation8_spill]]  ;;  %v2084_v56 = vld [vmem:[%s2751_s7] ss:$0 sm:$0xff] }
  0x1a   :  { %v2083_v60 = vld [vmem:[%s2749_s5] ss:$0 sm:$0xff]  ;;  %s2777_s30 = sld [smem:[#allocation6_spill]] }
  0x1b   :  { %v2085_v63 = vld [vmem:[%s2753_s9] ss:$0 sm:$0xff] }
  0x1c   :  { %206 = vmatpush.bf16.msra.mxu1 %v2038_v27 }
  0x1d   :  { %v2037_v21 = vld [vmem:[%s2774_s26 + $0x8] sm:$0xff]  ;;  %v2036_v26 = vld [vmem:[%s2774_s26] sm:$0xff]  ;;  %240 = vmatpush.bf16.msra.mxu2 %v2040_v28  ;;  %v2044_v62 = vld [vmem:[%s2774_s26 + $0x18] sm:$0xff] }
  0x1e   :  { %v2112_v5 = vpop.eup %2111  ;;  %171 = vmatpush.bf16.msra.mxu0 %v2037_v21  ;;  %v2081_v45 = vld [vmem:[%s2775_s25] ss:$0 sm:$0xff]  ;;  %v2043_v3 = vld [vmem:[%s2774_s26 + $0x10] sm:$0xff]  ;;  %s1754_s25 = sshll.u32 %s2764_s20, 4  ;;  %s1755_s25 = int_to_ptr.hbm [resolvable:$true] %s1754_s25 }
  0x1f   :  { %v79_v6 = vmul.f32 32.0, %v2112_v5  ;;  %vm83_vm1 = vweird.f32 %v2112_v5  ;;  %v2082_v49 = vld [vmem:[%s2776_s28] ss:$0 sm:$0xff] }
  0x20   :  { %v2399_v23 = vld [vmem:[%s2777_s30 + $0x1] ss:$0 sm:$0xff] }
  0x21   :  { %v80_v7 = vsub.f32 1.0, %v79_v6 }
  0x22   :  { %172 = vmatpush.bf16.msra.mxu0 %v2036_v26 }
  0x23   :  { %v81_v8 = vmul.f32 %v2112_v5, %v80_v7 }
  0x25   :  { %v82_v9 = vadd.f32 %v2112_v5, %v81_v8 }
  0x27   :  { %v2319_v10 = vsel %vm83_vm1, %v2112_v5, %v82_v9 }
  0x81   :  { %v74_v11 = vpop.xlane.xlu0 %73 }
  0x82   :  { %v85_v12 = vmul.f32 %v2319_v10, %v74_v11  ;;  %v2046_v11 = vld [vmem:[%s2750_s6 + $0x18] sm:$0xff] }
  0x84   :  { %v87_v13 = vsub.f32 %v67_v0, %v85_v12 }
  0x86   :  { %v89_v14 = vmul.f32 %v87_v13, %v87_v13 }
  0x88   :  { %v91_v15 = vsel %vm71_vm0, %v89_v14, 0.0 }
  0x89   :  { %92 = vadd.xlane.f32.xlu1 %v91_v15  ;;  %v77_v16 = vpop.xlane.xlu0 %76 }
  0x8a   :  { %v86_v17 = vmul.f32 %v2319_v10, %v77_v16 }
  0x8c   :  { %v88_v18 = vsub.f32 %v68_v1, %v86_v17  ;;  %v2045_v17 = vld [vmem:[%s2750_s6 + $0x10] sm:$0xff] }
  0x8e   :  { %v90_v19 = vmul.f32 %v88_v18, %v88_v18 }
  0x90   :  { %v94_v20 = vsel %vm71_vm0, %v90_v19, 0.0 }
  0x91   :  { %95 = vadd.xlane.f32.xlu1 %v94_v20 }
  0xfc   :  { %v93_v24 = vpop.xlane.xlu1 %92 }
  0xfd   :  { %v97_v25 = vmul.f32 %v93_v24, %v2319_v10 }
  0xff   :  { %v99_v29 = vadd.f32 1e-12, %v97_v25 }
 0x101   :  { %2113 = vrsqrt.f32 %v99_v29  ;;  %vm107_vm3 = vweird.f32 %v99_v29 }
 0x104   :  { %v96_v30 = vpop.xlane.xlu1 %95 }
 0x105   :  { %v98_v31 = vmul.f32 %v96_v30, %v2319_v10 }
 0x107   :  { %v2114_v32 = vpop.eup %2113  ;;  %v100_v33 = vadd.f32 1e-12, %v98_v31 }
 0x108   :  { %v102_v34 = vmul.f32 %v2114_v32, %v99_v29  ;;  %vm108_vm2 = vweird.f32 %v2114_v32  ;;  %v2406_v29 = vld [vmem:[%s2777_s30] ss:$0 sm:$0xff] }
 0x109   :  { %2115 = vrsqrt.f32 %v100_v33  ;;  %vm109_vm4 = vmor %vm107_vm3, %vm108_vm2  ;;  %vm117_vm6 = vweird.f32 %v100_v33 }
 0x10a   :  { %v103_v35 = vmul.f32 %v2114_v32, %v102_v34 }
 0x10c   :  { %v104_v36 = vmul.f32 0.5, %v103_v35  ;;  %v2089_v35 = vld [vmem:[%s2751_s7 + $0x1] ss:$0 sm:$0xff] }
 0x10e   :  { %v105_v37 = vsub.f32 1.5, %v104_v36 }
 0x10f   :  { %v2116_v38 = vpop.eup %2115 }
 0x110   :  { %v106_v39 = vmul.f32 %v2114_v32, %v105_v37  ;;  %v112_v40 = vmul.f32 %v2116_v38, %v100_v33  ;;  %vm118_vm5 = vweird.f32 %v2116_v38  ;;  %v2088_v33 = vld [vmem:[%s2749_s5 + $0x1] ss:$0 sm:$0xff] }
 0x111   :  { %vm119_vm7 = vmor %vm117_vm6, %vm118_vm5 }
 0x112   :  { %v113_v41 = vmul.f32 %v2116_v38, %v112_v40  ;;  %v110_v42 = vsel %vm109_vm4, %v2114_v32, %v106_v39 }
 0x113   :  { %v121_v46 = vmul.f32 %v110_v42, %v87_v13 }
 0x114   :  { %v114_v43 = vmul.f32 0.5, %v113_v41 }
 0x115   :  { %v126_v50 = vmul.f32 %v2081_v45, %v121_v46 }
 0x116   :  { %v115_v44 = vsub.f32 1.5, %v114_v43 }
 0x117   :  { %v2351_v53 = vadd.f32 %v2082_v49, %v126_v50 }
 0x118   :  { %v116_v47 = vmul.f32 %v2116_v38, %v115_v44 }
 0x11a   :  { %v120_v48 = vsel %vm119_vm7, %v2116_v38, %v116_v47 }
 0x11b   :  { %v122_v51 = vmul.f32 %v120_v48, %v88_v18 }
 0x11d   :  { %v127_v52 = vmul.f32 %v2081_v45, %v122_v51  ;;  %v2047_v51 = vld [vmem:[%s2752_s8 + $0x10] sm:$0xff] }
 0x11f   :  { %v2353_v54 = vadd.f32 %v2082_v49, %v127_v52  ;;  %v2048_v49 = vld [vmem:[%s2752_s8 + $0x18] sm:$0xff] }
 0x121   :  { %v2357_v55 = vpack.c.bf16 %v2353_v54, %v2351_v53 }
 0x123   :  { %1774 = vmatmul.msk.bf16.vlgmr.msra.gmra.mxu0 %vm71_vm0, %v2357_v55  ;;  %1783 = vmatmul.msk.bf16.vlgmr.msra.gmra.mxu1 %vm71_vm0, %v2357_v55 }
 0x124   :  { %1792 = vmatmul.msk.bf16.vlgmr.msra.gmra.mxu2 %vm71_vm0, %v2357_v55 }
 0x1a0   :  { %v208_v57 = vpop.f32.mrf.mxu1  ;;  %v174_v59 = vpop.f32.mrf.mxu0 }
 0x1a1   :  { %v209_v58 = vadd.f32 %v2084_v56, %v208_v57  ;;  %v175_v1 = vadd.f32 %v2083_v60, %v174_v59 }
 0x1a3   :  { %v249_v61 = vpack.c.bf16 %v209_v58, %v209_v58  ;;  %v247_v8 = vpack.c.bf16 %v175_v1, %v175_v1 }
 0x1a5   :  { %v258_v0 = vsel %vm253_vm8, %v249_v61, 0 }
 0x1a6   :  { %267 = vmatpush.bf16.xpose.msra.mxu3 %v258_v0 }
 0x1a7   :  { %v242_v2 = vpop.f32.mrf.mxu2 }
 0x1a8   :  { %v243_v4 = vadd.f32 %v2085_v63, %v242_v2  ;;  %v210_v5 = vpop.f32.mrf.mxu1  ;;  %v176_v12 = vpop.f32.mrf.mxu0 }
 0x1a9   :  { %v211_v6 = vadd.f32 %v2084_v56, %v210_v5  ;;  %v177_v15 = vadd.f32 %v2083_v60, %v176_v12  ;;  %v2090_v12 = vld [vmem:[%s2753_s9 + $0x1] ss:$0 sm:$0xff] }
 0x1aa   :  { %v251_v7 = vpack.c.bf16 %v243_v4, %v243_v4 }
 0x1ab   :  { %v250_v9 = vpack.c.bf16 %v211_v6, %v211_v6  ;;  %v248_v20 = vpack.c.bf16 %v177_v15, %v177_v15 }
 0x1ac   :  { %v322_v13 = vsel %vm320_vm9, %v251_v7, 0 }
 0x1ad   :  { %331 = vmatpush.bf16.msrb.mxu1 %v322_v13  ;;  %1793 = vmatmul.msk.bf16.vlgmr.msra.gmra.mxu3 %vm253_vm8, %v247_v8  ;;  %v277_v14 = vsel %vm253_vm8, %v250_v9, 0 }
 0x1ae   :  { %391 = vmatpush.bf16.msrb.mxu3 %v2044_v62  ;;  %286 = vmatpush.bf16.xpose.msrb.mxu0 %v277_v14 }
 0x1af   :  { %v244_v16 = vpop.f32.mrf.mxu2 }
 0x1b0   :  { %v245_v18 = vadd.f32 %v2085_v63, %v244_v16 }
 0x1b1   :  { %463 = vmatpush.bf16.msra.mxu1 %v2048_v49 }
 0x1b2   :  { %392 = vmatpush.bf16.msrb.mxu3 %v2043_v3  ;;  %v252_v19 = vpack.c.bf16 %v245_v18, %v245_v18 }
 0x1b4   :  { %v341_v21 = vsel %vm320_vm9, %v252_v19, 0 }
 0x1b5   :  { %350 = vmatpush.bf16.msrb.mxu2 %v341_v21  ;;  %1794 = vmatmul.msk.bf16.vlgmr.msrb.gmra.mxu0 %vm253_vm8, %v248_v20 }
 0x1b6   :  { %427 = vmatpush.bf16.msra.mxu0 %v2046_v11  ;;  %464 = vmatpush.bf16.msra.mxu1 %v2047_v51 }
 0x1ba   :  { %428 = vmatpush.bf16.msra.mxu0 %v2045_v17 }
 0x1bd   :  { %1810 = vmatmul.msk.bf16.vlgmr.msrb.gmra.mxu3 %vm71_vm0, %v2357_v55 }
 0x1c5   :  { %1824 = vmatmul.msk.bf16.vlgmr.msra.gmra.mxu0 %vm71_vm0, %v2357_v55 }
 0x230   :  { %v269_v22 = vpop.f32.mrf.mxu3 }
 0x231   :  { %v292_v27 = vmul.f32 0.25, %v269_v22 }
 0x232   :  { %v288_v24 = vpop.f32.mrf.mxu0 }
 0x233   :  { %v293_v25 = vmul.f32 0.25, %v288_v24  ;;  %v294_v32 = vadd.f32 %v2406_v29, %v292_v27 }
 0x235   :  { %v295_v26 = vadd.f32 %v2399_v23, %v293_v25  ;;  %v297_v34 = vsel %vm296_vm10, %v294_v32, -inf }
 0x237   :  { %v300_v28 = vsel %vm296_vm10, %v295_v26, -inf }
 0x238   :  { %301 = vmax.xlane.f32.xlu2 %v300_v28  ;;  %v271_v30 = vpop.f32.mrf.mxu3 }
 0x23a   :  { %v290_v31 = vpop.f32.mrf.mxu0 }
 0x240   :  { %298 = vmax.xlane.f32.xlu2 %v297_v34  ;;  %v394_v36 = vpop.f32.mrf.mxu3  ;;  %v2042_v34 = vld [vmem:[%s2754_s10] sm:$0xff] }
 0x241   :  { %v395_v37 = vadd.f32 %v2088_v33, %v394_v36 }
 0x242   :  { %v430_v38 = vpop.f32.mrf.mxu0 }
 0x243   :  { %v431_v39 = vadd.f32 %v2089_v35, %v430_v38  ;;  %v471_v1 = vpack.c.bf16 %v395_v37, %v395_v37 }
 0x245   :  { %v473_v40 = vpack.c.bf16 %v431_v39, %v431_v39 }
 0x247   :  { %v481_v41 = vsel %vm253_vm8, %v473_v40, 0 }
 0x248   :  { %490 = vmatpush.bf16.xpose.msra.mxu2 %v481_v41  ;;  %v396_v45 = vpop.f32.mrf.mxu3 }
 0x249   :  { %v397_v47 = vadd.f32 %v2088_v33, %v396_v45 }
 0x24a   :  { %v432_v42 = vpop.f32.mrf.mxu0 }
 0x24b   :  { %v433_v43 = vadd.f32 %v2089_v35, %v432_v42  ;;  %v472_v48 = vpack.c.bf16 %v397_v47, %v397_v47 }
 0x24d   :  { %v474_v44 = vpack.c.bf16 %v433_v43, %v433_v43 }
 0x24f   :  { %v500_v46 = vsel %vm253_vm8, %v474_v44, 0 }
 0x250   :  { %509 = vmatpush.bf16.xpose.msra.mxu3 %v500_v46 }
 0x257   :  { %1840 = vmatmul.msk.bf16.vlgmr.msra.gmra.mxu3 %vm253_vm8, %v472_v48 }
 0x258   :  { %624 = vmatpush.bf16.msrb.mxu3 %v2042_v34 }
 0x2ab   :  { %v302_v50 = vpop.xlane.xlu2 %301 }
 0x2ac   :  { %v304_v52 = vsub.f32 %v295_v26, %v302_v50  ;;  %v2049_v50 = vld [vmem:[%s2754_s10 + $0x8] sm:$0xff] }
 0x2ae   :  { %v307_v56 = vmul.f32 1.442695, %v304_v52 }
 0x2b0   :  { %2117 = vpow2.f32 %v307_v56 }
 0x2b3   :  { %v299_v57 = vpop.xlane.xlu2 %298 }
 0x2b4   :  { %v303_v58 = vsub.f32 %v294_v32, %v299_v57 }
 0x2b6   :  { %v2118_v59 = vpop.eup %2117  ;;  %v305_v60 = vmul.f32 1.442695, %v303_v58 }
 0x2b7   :  { %v316_v61 = vpack.c.bf16 %v2118_v59, %v2118_v59  ;;  %v312_v28 = vsel %vm296_vm10, %v2118_v59, 0.0 }
 0x2b8   :  { %2119 = vpow2.f32 %v305_v60 }
 0x2b9   :  { %1796 = vmatmul.msk.bf16.vlgmr.msrb.gmra.mxu2 %vm296_vm10, %v316_v61 }
 0x2ba   :  { %601 = vmatpush.bf16.msrb.mxu2 %v2049_v50 }
 0x2be   :  { %v2120_v62 = vpop.eup %2119 }
 0x2bf   :  { %v309_v63 = vsel %vm296_vm10, %v2120_v62, 0.0  ;;  %v315_v0 = vpack.c.bf16 %v2120_v62, %v2120_v62 }
 0x2c0   :  { %310 = vadd.xlane.f32.xlu2 %v309_v63 }
 0x2c1   :  { %1795 = vmatmul.msk.bf16.vlgmr.msrb.gmra.mxu1 %vm296_vm10, %v315_v0  ;;  %v2091_v0 = vld [vmem:[%s2755_s11] ss:$0 sm:$0xff] }
 0x2c9   :  { %1839 = vmatmul.msk.bf16.vlgmr.msra.gmra.mxu2 %vm253_vm8, %v471_v1 }
 0x2d1   :  { %1838 = vmatmul.msk.bf16.vlgmr.msra.gmra.mxu1 %vm71_vm0, %v2357_v55 }
 0x2da   :  { %v511_v2 = vpop.f32.mrf.mxu3 }
 0x2db   :  { %v516_v3 = vmul.f32 0.25, %v511_v2 }
 0x2dd   :  { %v518_v4 = vadd.f32 %v2399_v23, %v516_v3 }
 0x2df   :  { %v522_v5 = vsel %vm296_vm10, %v518_v4, -inf }
 0x2e0   :  { %523 = vmax.xlane.f32.xlu1 %v522_v5 }
 0x2e2   :  { %v513_v6 = vpop.f32.mrf.mxu3 }
 0x333   :  { %v311_v38 = vpop.xlane.xlu2 %310 }
 0x33c   :  { %v352_v7 = vpop.f32.mrf.mxu2 }
 0x33e   :  { %v333_v8 = vpop.f32.mrf.mxu1 }
 0x344   :  { %v354_v9 = vpop.f32.mrf.mxu2 }
 0x346   :  { %v335_v11 = vpop.f32.mrf.mxu1 }
 0x34c   :  { %v492_v13 = vpop.f32.mrf.mxu2 }
 0x34d   :  { %v515_v14 = vmul.f32 0.25, %v492_v13 }
 0x34e   :  { %v466_v15 = vpop.f32.mrf.mxu1 }
 0x34f   :  { %v467_v55 = vadd.f32 %v2090_v12, %v466_v15  ;;  %v517_v16 = vadd.f32 %v2406_v29, %v515_v14 }
 0x351   :  { %v475_v17 = vpack.c.bf16 %v467_v55, %v467_v55  ;;  %v519_v18 = vsel %vm296_vm10, %v517_v16, -inf }
 0x352   :  { %520 = vmax.xlane.f32.xlu0 %v519_v18 }
 0x353   :  { %v543_v19 = vsel %vm320_vm9, %v475_v17, 0  ;;  %v524_v20 = vpop.xlane.xlu1 %523 }
 0x354   :  { %v526_v21 = vsub.f32 %v518_v4, %v524_v20  ;;  %v494_v22 = vpop.f32.mrf.mxu2  ;;  %552 = vmatpush.bf16.msrb.mxu0 %v543_v19 }
 0x356   :  { %v529_v24 = vmul.f32 1.442695, %v526_v21  ;;  %v468_v25 = vpop.f32.mrf.mxu1 }
 0x357   :  { %v469_v26 = vadd.f32 %v2090_v12, %v468_v25  ;;  %v2050_v25 = vld [vmem:[%s2758_s14] sm:$0xff] }
 0x358   :  { %2121 = vpow2.f32 %v529_v24 }
 0x359   :  { %v476_v27 = vpack.c.bf16 %v469_v26, %v469_v26 }
 0x35a   :  { %313 = vadd.xlane.f32.xlu0 %v312_v28 }
 0x35b   :  { %v562_v30 = vsel %vm320_vm9, %v476_v27, 0 }
 0x35c   :  { %571 = vmatpush.bf16.msrb.mxu1 %v562_v30 }
 0x35e   :  { %v2122_v31 = vpop.eup %2121 }
 0x35f   :  { %v538_v32 = vpack.c.bf16 %v2122_v31, %v2122_v31  ;;  %v534_v33 = vsel %vm296_vm10, %v2122_v31, 0.0 }
 0x360   :  { %535 = vadd.xlane.f32.xlu2 %v534_v33 }
 0x361   :  { %1842 = vmatmul.msk.bf16.vlgmr.msrb.gmra.mxu1 %vm296_vm10, %v538_v32 }
 0x3c5   :  { %v521_v35 = vpop.xlane.xlu0 %520 }
 0x3c6   :  { %v525_v36 = vsub.f32 %v517_v16, %v521_v35 }
 0x3c8   :  { %v527_v37 = vmul.f32 1.442695, %v525_v36 }
 0x3ca   :  { %2123 = vpow2.f32 %v527_v37 }
 0x3cb   :  { %2125 = vrcp.f32 %v311_v38 }
 0x3cd   :  { %v314_v39 = vpop.xlane.xlu0 %313 }
 0x3ce   :  { %2127 = vrcp.f32 %v314_v39 }
 0x3d0   :  { %v2124_v40 = vpop.eup %2123 }
 0x3d1   :  { %v537_v41 = vpack.c.bf16 %v2124_v40, %v2124_v40  ;;  %v531_v42 = vsel %vm296_vm10, %v2124_v40, 0.0  ;;  %v2126_v43 = vpop.eup %2125 }
 0x3d2   :  { %532 = vadd.xlane.f32.xlu1 %v531_v42  ;;  %v358_v45 = vmul.f32 %v2126_v43, %v333_v8  ;;  %v2092_v42 = vld [vmem:[%s2756_s12] ss:$0 sm:$0xff] }
 0x3d3   :  { %1841 = vmatmul.msk.bf16.vlgmr.msrb.gmra.mxu0 %vm296_vm10, %v537_v41  ;;  %v536_v51 = vpop.xlane.xlu2 %535 }
 0x3d4   :  { %v2128_v44 = vpop.eup %2127  ;;  %2129 = vrcp.f32 %v536_v51 }
 0x3d5   :  { %v359_v46 = vmul.f32 %v2128_v44, %v352_v7 }
 0x3d7   :  { %v360_v47 = vpack.c.bf16 %v359_v46, %v358_v45  ;;  %v2093_v46 = vld [vmem:[%s2757_s13] ss:$0 sm:$0xff] }
 0x3d9   :  { %1854 = vmatmul.msk.bf16.vlgmr.msrb.gmra.mxu3 %vm253_vm8, %v360_v47 }
 0x3da   :  { %v2130_v56 = vpop.eup %2129 }
 0x3de   :  { %v573_v48 = vpop.f32.mrf.mxu1 }
 0x3df   :  { %v580_v59 = vmul.f32 %v2130_v56, %v573_v48  ;;  %v2202_v56 = vmov 1.4142135  }
 0x3e6   :  { %v575_v49 = vpop.f32.mrf.mxu1 }
 0x445   :  { %v533_v52 = vpop.xlane.xlu1 %532 }
 0x446   :  { %2131 = vrcp.f32 %v533_v52 }
 0x44c   :  { %v2132_v57 = vpop.eup %2131 }
 0x450   :  { %v554_v58 = vpop.f32.mrf.mxu0 }
 0x451   :  { %v579_v60 = vmul.f32 %v2132_v57, %v554_v58 }
 0x453   :  { %v581_v61 = vpack.c.bf16 %v580_v59, %v579_v60 }
 0x455   :  { %1849 = vmatmul.msk.bf16.vlgmr.msrb.gmra.mxu2 %vm253_vm8, %v581_v61 }
 0x458   :  { %v556_v62 = vpop.f32.mrf.mxu0 }
 0x459   :  { %v2094_v62 = vld [vmem:[%s2759_s15] ss:$0 sm:$0xff] }
 0x45c   :  { %v626_v63 = vpop.f32.mrf.mxu3 }
 0x464   :  { %v628_v6 = vpop.f32.mrf.mxu3 }
 0x4d8   :  { %v603_v1 = vpop.f32.mrf.mxu2 }
 0x4d9   :  { %v627_v2 = vadd.f32 %v626_v63, %v603_v1 }
 0x4db   :  { %v635_v3 = vadd.f32 %v2091_v0, %v627_v2 }
 0x4dd   :  { %v637_v4 = vadd.f32 %v635_v3, %v2351_v53 }
 0x4df   :  { %v641_v5 = vsel %vm71_vm0, %v637_v4, 0.0 }
 0x4e0   :  { %642 = vadd.xlane.f32.xlu0 %v641_v5  ;;  %v605_v7 = vpop.f32.mrf.mxu2 }
 0x4e1   :  { %v629_v8 = vadd.f32 %v628_v6, %v605_v7 }
 0x4e3   :  { %v636_v9 = vadd.f32 %v2091_v0, %v629_v8 }
 0x4e5   :  { %v638_v11 = vadd.f32 %v636_v9, %v2353_v54  ;;  %v2051_v54 = vld [vmem:[%s2758_s14 + $0x8] sm:$0xff] }
 0x4e6   :  { %725 = vmatpush.bf16.msra.mxu0 %v2051_v54 }
 0x4e7   :  { %v644_v12 = vsel %vm71_vm0, %v638_v11, 0.0 }
 0x4e8   :  { %645 = vadd.xlane.f32.xlu1 %v644_v12 }
 0x4ea   :  { %726 = vmatpush.bf16.msra.mxu0 %v2050_v25 }
 0x553   :  { %v643_v13 = vpop.xlane.xlu0 %642 }
 0x554   :  { %v647_v14 = vmul.f32 %v643_v13, %v2319_v10 }
 0x556   :  { %v649_v15 = vsub.f32 %v637_v4, %v647_v14 }
 0x558   :  { %v651_v55 = vmul.f32 %v649_v15, %v649_v15 }
 0x55a   :  { %v653_v16 = vsel %vm71_vm0, %v651_v55, 0.0 }
 0x55b   :  { %654 = vadd.xlane.f32.xlu2 %v653_v16  ;;  %v646_v53 = vpop.xlane.xlu1 %645 }
 0x55c   :  { %v648_v17 = vmul.f32 %v646_v53, %v2319_v10 }
 0x55e   :  { %v650_v18 = vsub.f32 %v638_v11, %v648_v17 }
 0x560   :  { %v652_v19 = vmul.f32 %v650_v18, %v650_v18 }
 0x562   :  { %v656_v20 = vsel %vm71_vm0, %v652_v19, 0.0  ;;  %v2055_v19 = vld [vmem:[%s2760_s16 + $0x18] sm:$0xff] }
 0x563   :  { %657 = vadd.xlane.f32.xlu0 %v656_v20  ;;  %873 = vmatpush.bf16.msra.mxu1 %v2055_v19 }
 0x5ce   :  { %v655_v21 = vpop.xlane.xlu2 %654 }
 0x5cf   :  { %v659_v22 = vmul.f32 %v655_v21, %v2319_v10 }
 0x5d1   :  { %v661_v24 = vadd.f32 1e-12, %v659_v22 }
 0x5d3   :  { %2133 = vrsqrt.f32 %v661_v24  ;;  %vm669_vm12 = vweird.f32 %v661_v24 }
 0x5d6   :  { %v658_v26 = vpop.xlane.xlu0 %657 }
 0x5d7   :  { %v660_v27 = vmul.f32 %v658_v26, %v2319_v10  ;;  %v2054_v26 = vld [vmem:[%s2760_s16 + $0x10] sm:$0xff] }
 0x5d8   :  { %874 = vmatpush.bf16.msra.mxu1 %v2054_v26 }
 0x5d9   :  { %v2134_v28 = vpop.eup %2133  ;;  %v662_v30 = vadd.f32 1e-12, %v660_v27 }
 0x5da   :  { %v664_v31 = vmul.f32 %v2134_v28, %v661_v24  ;;  %vm670_vm11 = vweird.f32 %v2134_v28 }
 0x5db   :  { %2135 = vrsqrt.f32 %v662_v30  ;;  %vm671_vm13 = vmor %vm669_vm12, %vm670_vm11  ;;  %vm679_vm15 = vweird.f32 %v662_v30 }
 0x5dc   :  { %v665_v32 = vmul.f32 %v2134_v28, %v664_v31  ;;  %2137 = vrcp.f32 %v2202_v56 }
 0x5de   :  { %v666_v33 = vmul.f32 0.5, %v665_v32 }
 0x5e0   :  { %v667_v34 = vsub.f32 1.5, %v666_v33 }
 0x5e1   :  { %v2136_v35 = vpop.eup %2135 }
 0x5e2   :  { %v668_v36 = vmul.f32 %v2134_v28, %v667_v34  ;;  %v674_v37 = vmul.f32 %v2136_v35, %v662_v30  ;;  %vm680_vm14 = vweird.f32 %v2136_v35  ;;  %v2138_v57 = vpop.eup %2137  ;;  %v2053_v34 = vld [vmem:[%s2760_s16 + $0x8] sm:$0xff] }
 0x5e3   :  { %vm681_vm1 = vmor %vm679_vm15, %vm680_vm14  ;;  %v736_v58 = vmul.f32 1.4142135, %v2138_v57  ;;  %vm740_vm2 = vweird.f32 %v2138_v57  ;;  %875 = vmatpush.bf16.msra.mxu1 %v2053_v34  ;;  %vm865_vm14 = vcmask 523264  }
 0x5e4   :  { %v675_v38 = vmul.f32 %v2136_v35, %v674_v37  ;;  %v672_v39 = vsel %vm671_vm13, %v2134_v28, %v668_v36 }
 0x5e5   :  { %v683_v43 = vmul.f32 %v672_v39, %v649_v15  ;;  %v737_v59 = vsub.f32 1.0, %v736_v58 }
 0x5e6   :  { %v676_v40 = vmul.f32 0.5, %v675_v38 }
 0x5e7   :  { %v688_v47 = vmul.f32 %v2092_v42, %v683_v43  ;;  %v738_v60 = vmul.f32 %v2138_v57, %v737_v59 }
 0x5e8   :  { %v677_v41 = vsub.f32 1.5, %v676_v40  ;;  %v2052_v40 = vld [vmem:[%s2760_s16] sm:$0xff] }
 0x5e9   :  { %v2478_v50 = vadd.f32 %v2093_v46, %v688_v47  ;;  %v739_v61 = vadd.f32 %v2138_v57, %v738_v60  ;;  %876 = vmatpush.bf16.msra.mxu1 %v2052_v40 }
 0x5ea   :  { %v678_v44 = vmul.f32 %v2136_v35, %v677_v41 }
 0x5eb   :  { %v2488_v0 = vsel %vm740_vm2, %v2138_v57, %v739_v61 }
 0x5ec   :  { %v682_v45 = vsel %vm681_vm1, %v2136_v35, %v678_v44 }
 0x5ed   :  { %v684_v48 = vmul.f32 %v682_v45, %v650_v18 }
 0x5ef   :  { %v689_v49 = vmul.f32 %v2092_v42, %v684_v48 }
 0x5f1   :  { %v2480_v51 = vadd.f32 %v2093_v46, %v689_v49 }
 0x5f3   :  { %v695_v52 = vpack.c.bf16 %v2480_v51, %v2478_v50 }
 0x5f5   :  { %1863 = vmatmul.msk.bf16.vlgmr.msra.gmra.mxu0 %vm71_vm0, %v695_v52 }
 0x672   :  { %v728_v63 = vpop.f32.mrf.mxu0 }
 0x673   :  { %v2490_v1 = vadd.f32 %v2094_v62, %v728_v63 }
 0x675   :  { %v2494_v2 = vmul.f32 %v2488_v0, %v2490_v1 }
 0x677   :  { %v744_v3 = vmul.f32 %v2494_v2, %v2494_v2 }
 0x679   :  { %v745_v4 = vmin.f32 %v744_v3, 16.0 }
 0x67a   :  { %v730_v5 = vpop.f32.mrf.mxu0 }
 0x67b   :  { %v746_v6 = vmul.f32 2.1237322e-06, %v745_v4  ;;  %v757_v7 = vmul.f32 3.8918573e-05, %v745_v4  ;;  %v2498_v8 = vadd.f32 %v2094_v62, %v730_v5 }
 0x67d   :  { %v747_v9 = vadd.f32 0.00028619796, %v746_v6  ;;  %v758_v11 = vadd.f32 0.001143296, %v757_v7  ;;  %v2502_v12 = vmul.f32 %v2488_v0, %v2498_v8  ;;  %v734_v26 = vmul.f32 0.5, %v2498_v8 }
 0x67f   :  { %v759_v13 = vmul.f32 %v758_v11, %v745_v4  ;;  %v784_v14 = vmul.f32 %v2502_v12, %v2502_v12  ;;  %v748_v15 = vmul.f32 %v747_v9, %v745_v4 }
 0x681   :  { %v760_v55 = vadd.f32 0.014752088, %v759_v13  ;;  %v785_v16 = vmin.f32 %v784_v14, 16.0  ;;  %v749_v20 = vadd.f32 0.0036580483, %v748_v15 }
 0x683   :  { %v761_v53 = vmul.f32 %v760_v55, %v745_v4  ;;  %v786_v17 = vmul.f32 2.1237322e-06, %v785_v16  ;;  %v797_v18 = vmul.f32 3.8918573e-05, %v785_v16  ;;  %v750_v28 = vmul.f32 %v749_v20, %v745_v4 }
 0x685   :  { %v762_v54 = vadd.f32 0.112945676, %v761_v53  ;;  %v787_v21 = vadd.f32 0.00028619796, %v786_v17  ;;  %v798_v22 = vadd.f32 0.001143296, %v797_v18 }
 0x686   :  { %v751_v36 = vadd.f32 0.05243302, %v750_v28 }
 0x687   :  { %v763_v24 = vmul.f32 %v762_v54, %v745_v4  ;;  %v788_v25 = vmul.f32 %v787_v21, %v785_v16  ;;  %v799_v27 = vmul.f32 %v798_v22, %v785_v16 }
 0x688   :  { %v752_v42 = vmul.f32 %v751_v36, %v745_v4 }
 0x689   :  { %v764_v30 = vadd.f32 0.4994258, %v763_v24  ;;  %v789_v31 = vadd.f32 0.0036580483, %v788_v25  ;;  %v800_v32 = vadd.f32 0.014752088, %v799_v27 }
 0x68a   :  { %v753_v47 = vadd.f32 0.18741608, %v752_v42  ;;  %v733_v25 = vmul.f32 0.5, %v2490_v1 }
 0x68b   :  { %v765_v33 = vmul.f32 %v764_v30, %v745_v4  ;;  %v801_v35 = vmul.f32 %v800_v32, %v785_v16  ;;  %v790_v38 = vmul.f32 %v789_v31, %v785_v16 }
 0x68c   :  { %v754_v57 = vmul.f32 %v753_v47, %v745_v4  ;;  %v2059_v47 = vld [vmem:[%s2750_s6 + $0x28] sm:$0xff] }
 0x68d   :  { %v766_v37 = vadd.f32 1.0, %v765_v33  ;;  %v802_v39 = vadd.f32 0.112945676, %v801_v35  ;;  %v791_v43 = vadd.f32 0.05243302, %v790_v38  ;;  %1009 = vmatpush.bf16.msra.mxu3 %v2059_v47 }
 0x68e   :  { %v755_v63 = vadd.f32 1.1283791, %v754_v57  ;;  %v2056_v57 = vld [vmem:[%s2774_s26 + $0x20] sm:$0xff] }
 0x68f   :  { %2139 = vrcp.f32 %v766_v37  ;;  %v803_v41 = vmul.f32 %v802_v39, %v785_v16  ;;  %v792_v49 = vmul.f32 %v791_v43, %v785_v16  ;;  %v778_v59 = vand.u32 2147483648, %v766_v37 }
 0x690   :  { %v776_v61 = vand.u32 2147483647, %v766_v37  ;;  %vm772_vm4 = vweird.f32 %v766_v37  ;;  %v756_v13 = vmul.f32 %v755_v63, %v2494_v2 }
 0x691   :  { %v804_v44 = vadd.f32 0.4994258, %v803_v41  ;;  %v793_v60 = vadd.f32 0.18741608, %v792_v49  ;;  %v779_v6 = vor.u32 1.1754944e-38, %v778_v59  ;;  %v2060_v59 = vld [vmem:[%s2752_s8 + $0x20] sm:$0xff] }
 0x692   :  { %vm777_vm6 = vcmp.eq.f32.partialorder %v776_v61, 8.507059e+37 }
 0x693   :  { %v805_v45 = vmul.f32 %v804_v44, %v785_v16  ;;  %v794_v7 = vmul.f32 %v793_v60, %v785_v16 }
 0x695   :  { %v2140_v46 = vpop.eup %2139  ;;  %v806_v52 = vadd.f32 1.0, %v805_v45  ;;  %v795_v4 = vadd.f32 1.1283791, %v794_v7 }
 0x696   :  { %v768_v48 = vmul.f32 %v2140_v46, %v766_v37  ;;  %vm773_vm3 = vweird.f32 %v2140_v46 }
 0x697   :  { %2141 = vrcp.f32 %v806_v52  ;;  %vm774_vm5 = vmor %vm772_vm4, %vm773_vm3  ;;  %v818_v15 = vand.u32 2147483648, %v806_v52  ;;  %v816_v17 = vand.u32 2147483647, %v806_v52  ;;  %vm812_vm11 = vweird.f32 %v806_v52 }
 0x698   :  { %v769_v56 = vsub.f32 1.0, %v768_v48  ;;  %v796_v54 = vmul.f32 %v795_v4, %v2502_v12  ;;  %v2095_v12 = vld [vmem:[%s2761_s17] ss:$0 sm:$0xff]  ;;  %v2061_v48 = vld [vmem:[%s2752_s8 + $0x28] sm:$0xff] }
 0x699   :  { %v819_v19 = vor.u32 1.1754944e-38, %v818_v15  ;;  %vm817_vm13 = vcmp.eq.f32.partialorder %v816_v17, 8.507059e+37  ;;  %1045 = vmatpush.bf16.msrb.mxu0 %v2061_v48  ;;  %v2065_v48 = vld [vmem:[%s2750_s6 + $0x30] sm:$0xff] }
 0x69a   :  { %v770_v58 = vmul.f32 %v2140_v46, %v769_v56 }
 0x69c   :  { %v771_v62 = vadd.f32 %v2140_v46, %v770_v58  ;;  %v2058_v58 = vld [vmem:[%s2750_s6 + $0x20] sm:$0xff] }
 0x69d   :  { %v2142_v3 = vpop.eup %2141  ;;  %1010 = vmatpush.bf16.msra.mxu3 %v2058_v58  ;;  %1046 = vmatpush.bf16.msrb.mxu0 %v2060_v59 }
 0x69e   :  { %v775_v5 = vsel %vm774_vm5, %v2140_v46, %v771_v62  ;;  %v808_v9 = vmul.f32 %v2142_v3, %v806_v52  ;;  %vm813_vm7 = vweird.f32 %v2142_v3 }
 0x69f   :  { %v780_v11 = vsel %vm777_vm6, %v779_v6, %v775_v5  ;;  %vm814_vm12 = vmor %vm812_vm11, %vm813_vm7 }
 0x6a0   :  { %v809_v14 = vsub.f32 1.0, %v808_v9  ;;  %v781_v55 = vmul.f32 %v780_v11, %v756_v13 }
 0x6a2   :  { %v810_v53 = vmul.f32 %v2142_v3, %v809_v14  ;;  %v1864_v20 = vclamps-f32 %v781_v55, 1.0 }
 0x6a4   :  { %v811_v18 = vadd.f32 %v2142_v3, %v810_v53  ;;  %v824_v24 = vadd.f32 1.0, %v1864_v20  ;;  %v2096_v53 = vld [vmem:[%s2762_s18] ss:$0 sm:$0xff] }
 0x6a5   :  { %v2097_v20 = vld [vmem:[%s2763_s19] ss:$0 sm:$0xff] }
 0x6a6   :  { %v815_v16 = vsel %vm814_vm12, %v2142_v3, %v811_v18  ;;  %v826_v28 = vmul.f32 %v824_v24, %v733_v25  ;;  %v2098_v25 = vld [vmem:[%s2753_s9 + $0x2] ss:$0 sm:$0xff] }
 0x6a7   :  { %v820_v21 = vsel %vm817_vm13, %v819_v19, %v815_v16 }
 0x6a8   :  { %v821_v22 = vmul.f32 %v820_v21, %v796_v54 }
 0x6aa   :  { %v1865_v2 = vclamps-f32 %v821_v22, 1.0 }
 0x6ac   :  { %v825_v27 = vadd.f32 1.0, %v1865_v2 }
 0x6ae   :  { %v827_v30 = vmul.f32 %v825_v27, %v734_v26 }
 0x6b0   :  { %v828_v31 = vpack.c.bf16 %v827_v30, %v826_v28  ;;  %v2100_v28 = vld [vmem:[%s2751_s7 + $0x2] ss:$0 sm:$0xff] }
 0x6b2   :  { %1882 = vmatmul.msk.bf16.vlgmr.msra.gmra.mxu1 %vm865_vm14, %v828_v31 }
 0x72f   :  { %v878_v32 = vpop.f32.mrf.mxu1 }
 0x730   :  { %v879_v33 = vadd.f32 %v2095_v12, %v878_v32 }
 0x732   :  { %v883_v34 = vadd.f32 %v879_v33, %v2478_v50 }
 0x734   :  { %v887_v35 = vsel %vm71_vm0, %v883_v34, 0.0 }
 0x735   :  { %888 = vadd.xlane.f32.xlu1 %v887_v35 }
 0x737   :  { %v880_v1 = vpop.f32.mrf.mxu1 }
 0x738   :  { %v881_v8 = vadd.f32 %v2095_v12, %v880_v1 }
 0x73a   :  { %v884_v36 = vadd.f32 %v881_v8, %v2480_v51  ;;  %v2057_v51 = vld [vmem:[%s2774_s26 + $0x28] sm:$0xff]  ;;  %v2064_v8 = vld [vmem:[%s2774_s26 + $0x38] sm:$0xff] }
 0x73b   :  { %973 = vmatpush.bf16.msra.mxu2 %v2057_v51 }
 0x73c   :  { %v890_v37 = vsel %vm71_vm0, %v884_v36, 0.0 }
 0x73d   :  { %891 = vadd.xlane.f32.xlu2 %v890_v37 }
 0x73f   :  { %974 = vmatpush.bf16.msra.mxu2 %v2056_v57 }
 0x7a8   :  { %v889_v38 = vpop.xlane.xlu1 %888 }
 0x7a9   :  { %v893_v39 = vmul.f32 %v889_v38, %v2319_v10 }
 0x7ab   :  { %v895_v40 = vsub.f32 %v883_v34, %v893_v39  ;;  %v2099_v34 = vld [vmem:[%s2749_s5 + $0x2] ss:$0 sm:$0xff] }
 0x7ad   :  { %v897_v41 = vmul.f32 %v895_v40, %v895_v40 }
 0x7af   :  { %v899_v42 = vsel %vm71_vm0, %v897_v41, 0.0 }
 0x7b0   :  { %v892_v43 = vpop.xlane.xlu2 %891  ;;  %900 = vadd.xlane.f32.xlu0 %v899_v42 }
 0x7b1   :  { %v894_v50 = vmul.f32 %v892_v43, %v2319_v10 }
 0x7b3   :  { %v896_v44 = vsub.f32 %v884_v36, %v894_v50 }
 0x7b5   :  { %v898_v45 = vmul.f32 %v896_v44, %v896_v44 }
 0x7b7   :  { %v902_v46 = vsel %vm71_vm0, %v898_v45, 0.0  ;;  %v2066_v45 = vld [vmem:[%s2750_s6 + $0x38] sm:$0xff] }
 0x7b8   :  { %903 = vadd.xlane.f32.xlu1 %v902_v46 }
 0x823   :  { %v901_v49 = vpop.xlane.xlu0 %900 }
 0x824   :  { %v905_v52 = vmul.f32 %v901_v49, %v2319_v10 }
 0x826   :  { %v907_v56 = vadd.f32 1e-12, %v905_v52 }
 0x828   :  { %2143 = vrsqrt.f32 %v907_v56  ;;  %vm915_vm1 = vweird.f32 %v907_v56 }
 0x82b   :  { %v904_v60 = vpop.xlane.xlu1 %903 }
 0x82c   :  { %v906_v61 = vmul.f32 %v904_v60, %v2319_v10  ;;  %v2101_v60 = vld [vmem:[%s2749_s5 + $0x3] ss:$0 sm:$0xff] }
 0x82e   :  { %v2144_v62 = vpop.eup %2143  ;;  %v908_v63 = vadd.f32 1e-12, %v906_v61 }
 0x82f   :  { %v910_v3 = vmul.f32 %v2144_v62, %v907_v56  ;;  %vm916_vm15 = vweird.f32 %v2144_v62 }
 0x830   :  { %2145 = vrsqrt.f32 %v908_v63  ;;  %vm917_vm2 = vmor %vm915_vm1, %vm916_vm15  ;;  %vm925_vm4 = vweird.f32 %v908_v63 }
 0x831   :  { %v911_v5 = vmul.f32 %v2144_v62, %v910_v3 }
 0x833   :  { %v912_v6 = vmul.f32 0.5, %v911_v5 }
 0x835   :  { %v913_v7 = vsub.f32 1.5, %v912_v6 }
 0x836   :  { %v2146_v9 = vpop.eup %2145 }
 0x837   :  { %v914_v11 = vmul.f32 %v2144_v62, %v913_v7  ;;  %v920_v13 = vmul.f32 %v2146_v9, %v908_v63  ;;  %vm926_vm3 = vweird.f32 %v2146_v9 }
 0x838   :  { %vm927_vm5 = vmor %vm925_vm4, %vm926_vm3 }
 0x839   :  { %v921_v14 = vmul.f32 %v2146_v9, %v920_v13  ;;  %v918_v4 = vsel %vm917_vm2, %v2144_v62, %v914_v11 }
 0x83a   :  { %v929_v17 = vmul.f32 %v918_v4, %v895_v40  ;;  %v2063_v40 = vld [vmem:[%s2774_s26 + $0x30] sm:$0xff] }
 0x83b   :  { %v922_v15 = vmul.f32 0.5, %v921_v14 }
 0x83c   :  { %v934_v54 = vmul.f32 %v2096_v53, %v929_v17 }
 0x83d   :  { %v923_v55 = vsub.f32 1.5, %v922_v15 }
 0x83e   :  { %v2560_v22 = vadd.f32 %v2097_v20, %v934_v54  ;;  %v2068_v54 = vld [vmem:[%s2752_s8 + $0x38] sm:$0xff] }
 0x83f   :  { %v924_v18 = vmul.f32 %v2146_v9, %v923_v55 }
 0x841   :  { %v928_v19 = vsel %vm927_vm5, %v2146_v9, %v924_v18  ;;  %v2102_v9 = vld [vmem:[%s2751_s7 + $0x3] ss:$0 sm:$0xff] }
 0x842   :  { %v930_v16 = vmul.f32 %v928_v19, %v896_v44 }
 0x844   :  { %v935_v21 = vmul.f32 %v2096_v53, %v930_v16  ;;  %v2067_v16 = vld [vmem:[%s2752_s8 + $0x30] sm:$0xff] }
 0x846   :  { %v2562_v24 = vadd.f32 %v2097_v20, %v935_v21 }
 0x848   :  { %v2566_v2 = vpack.c.bf16 %v2562_v24, %v2560_v22 }
 0x84a   :  { %1896 = vmatmul.msk.bf16.vlgmr.msra.gmra.mxu2 %vm71_vm0, %v2566_v2  ;;  %1910 = vmatmul.msk.bf16.vlgmr.msra.gmra.mxu3 %vm71_vm0, %v2566_v2 }
 0x84b   :  { %1924 = vmatmul.msk.bf16.vlgmr.msrb.gmra.mxu0 %vm71_vm0, %v2566_v2 }
 0x8c8   :  { %v1048_v26 = vpop.f32.mrf.mxu0 }
 0x8c9   :  { %v1049_v27 = vadd.f32 %v2098_v25, %v1048_v26 }
 0x8cb   :  { %v1057_v30 = vpack.c.bf16 %v1049_v27, %v1049_v27 }
 0x8cd   :  { %v1125_v31 = vsel %vm320_vm9, %v1057_v30, 0  ;;  %v1012_v12 = vpop.f32.mrf.mxu3  ;;  %v976_v33 = vpop.f32.mrf.mxu2 }
 0x8ce   :  { %v1013_v32 = vadd.f32 %v2100_v28, %v1012_v12  ;;  %1134 = vmatpush.bf16.msrb.mxu3 %v1125_v31  ;;  %v977_v39 = vadd.f32 %v2099_v34, %v976_v33 }
 0x8d0   :  { %v1055_v35 = vpack.c.bf16 %v1013_v32, %v1013_v32  ;;  %v1050_v1 = vpop.f32.mrf.mxu0  ;;  %v1053_v50 = vpack.c.bf16 %v977_v39, %v977_v39 }
 0x8d1   :  { %v1051_v36 = vadd.f32 %v2098_v25, %v1050_v1 }
 0x8d2   :  { %v1063_v37 = vsel %vm253_vm8, %v1055_v35, 0  ;;  %1267 = vmatpush.bf16.msra.mxu3 %v2068_v54  ;;  %v2069_v54 = vld [vmem:[%s2754_s10 + $0x18] sm:$0xff] }
 0x8d3   :  { %v1058_v38 = vpack.c.bf16 %v1051_v36, %v1051_v36  ;;  %1072 = vmatpush.bf16.xpose.msrb.mxu1 %v1063_v37 }
 0x8d5   :  { %v1144_v41 = vsel %vm320_vm9, %v1058_v38, 0  ;;  %v1014_v42 = vpop.f32.mrf.mxu3  ;;  %v978_v46 = vpop.f32.mrf.mxu2 }
 0x8d6   :  { %v1015_v43 = vadd.f32 %v2100_v28, %v1014_v42  ;;  %1153 = vmatpush.bf16.msra.mxu0 %v1144_v41  ;;  %v979_v47 = vadd.f32 %v2099_v34, %v978_v46  ;;  %1268 = vmatpush.bf16.msra.mxu3 %v2067_v16  ;;  %v2103_v42 = vld [vmem:[%s2753_s9 + $0x3] ss:$0 sm:$0xff] }
 0x8d8   :  { %v1056_v44 = vpack.c.bf16 %v1015_v43, %v1015_v43  ;;  %v1054_v49 = vpack.c.bf16 %v979_v47, %v979_v47 }
 0x8da   :  { %v1082_v51 = vsel %vm253_vm8, %v1056_v44, 0  ;;  %1925 = vmatmul.msk.bf16.vlgmr.msrb.gmra.mxu1 %vm253_vm8, %v1053_v50 }
 0x8db   :  { %1195 = vmatpush.bf16.msra.mxu1 %v2064_v8  ;;  %1091 = vmatpush.bf16.xpose.msrb.mxu2 %v1082_v51 }
 0x8df   :  { %1196 = vmatpush.bf16.msra.mxu1 %v2063_v40 }
 0x8e2   :  { %1926 = vmatmul.msk.bf16.vlgmr.msrb.gmra.mxu2 %vm253_vm8, %v1054_v49 }
 0x8e3   :  { %1231 = vmatpush.bf16.msra.mxu2 %v2066_v45 }
 0x8e7   :  { %1232 = vmatpush.bf16.msra.mxu2 %v2065_v48 }
 0x8ea   :  { %1944 = vmatmul.msk.bf16.vlgmr.msra.gmra.mxu1 %vm71_vm0, %v2566_v2 }
 0x8f2   :  { %1958 = vmatmul.msk.bf16.vlgmr.msra.gmra.mxu2 %vm71_vm0, %v2566_v2 }
 0x957   :  { %v1074_v52 = vpop.f32.mrf.mxu1 }
 0x958   :  { %v1097_v56 = vmul.f32 0.25, %v1074_v52 }
 0x95a   :  { %v1099_v57 = vadd.f32 %v2406_v29, %v1097_v56 }
 0x95c   :  { %v1101_v58 = vsel %vm296_vm10, %v1099_v57, -inf }
 0x95d   :  { %1102 = vmax.xlane.f32.xlu0 %v1101_v58 }
 0x95f   :  { %v1076_v59 = vpop.f32.mrf.mxu1 }
 0x965   :  { %v1093_v61 = vpop.f32.mrf.mxu2 }
 0x966   :  { %v1098_v62 = vmul.f32 0.25, %v1093_v61 }
 0x967   :  { %v1198_v63 = vpop.f32.mrf.mxu1 }
 0x968   :  { %v1199_v3 = vadd.f32 %v2101_v60, %v1198_v63  ;;  %v1100_v5 = vadd.f32 %v2399_v23, %v1098_v62 }
 0x96a   :  { %v1104_v6 = vsel %vm296_vm10, %v1100_v5, -inf  ;;  %v1275_v35 = vpack.c.bf16 %v1199_v3, %v1199_v3 }
 0x96b   :  { %1105 = vmax.xlane.f32.xlu2 %v1104_v6 }
 0x96d   :  { %v1095_v7 = vpop.f32.mrf.mxu2 }
 0x96f   :  { %v1200_v17 = vpop.f32.mrf.mxu1 }
 0x970   :  { %v1201_v19 = vadd.f32 %v2101_v60, %v1200_v17 }
 0x972   :  { %v1276_v20 = vpack.c.bf16 %v1201_v19, %v1201_v19 }
 0x975   :  { %v1234_v11 = vpop.f32.mrf.mxu2 }
 0x976   :  { %v1235_v13 = vadd.f32 %v2102_v9, %v1234_v11 }
 0x978   :  { %v1277_v14 = vpack.c.bf16 %v1235_v13, %v1235_v13 }
 0x97a   :  { %v1285_v4 = vsel %vm253_vm8, %v1277_v14, 0 }
 0x97b   :  { %1294 = vmatpush.bf16.xpose.msrb.mxu0 %v1285_v4 }
 0x97d   :  { %v1236_v15 = vpop.f32.mrf.mxu2 }
 0x97e   :  { %v1237_v55 = vadd.f32 %v2102_v9, %v1236_v15 }
 0x980   :  { %v1278_v53 = vpack.c.bf16 %v1237_v55, %v1237_v55 }
 0x982   :  { %v1304_v18 = vsel %vm253_vm8, %v1278_v53, 0 }
 0x983   :  { %1313 = vmatpush.bf16.xpose.msrb.mxu1 %v1304_v18 }
 0x98a   :  { %1974 = vmatmul.msk.bf16.vlgmr.msrb.gmra.mxu1 %vm253_vm8, %v1276_v20 }
 0x9d0   :  { %v1103_v21 = vpop.xlane.xlu0 %1102 }
 0x9d1   :  { %v1107_v25 = vsub.f32 %v1099_v57, %v1103_v21 }
 0x9d3   :  { %v1109_v26 = vmul.f32 1.442695, %v1107_v25 }
 0x9d5   :  { %2147 = vpow2.f32 %v1109_v26 }
 0x9db   :  { %v2148_v27 = vpop.eup %2147 }
 0x9dc   :  { %v1119_v28 = vpack.c.bf16 %v2148_v27, %v2148_v27  ;;  %v1113_v30 = vsel %vm296_vm10, %v2148_v27, 0.0 }
 0x9dd   :  { %1114 = vadd.xlane.f32.xlu0 %v1113_v30 }
 0x9de   :  { %v1106_v31 = vpop.xlane.xlu2 %1105  ;;  %1927 = vmatmul.msk.bf16.vlgmr.msrb.gmra.mxu3 %vm296_vm10, %v1119_v28 }
 0x9df   :  { %v1108_v12 = vsub.f32 %v1100_v5, %v1106_v31 }
 0x9e1   :  { %v1111_v32 = vmul.f32 1.442695, %v1108_v12 }
 0x9e3   :  { %2149 = vpow2.f32 %v1111_v32 }
 0x9e9   :  { %v2150_v33 = vpop.eup %2149 }
 0x9ea   :  { %v1120_v34 = vpack.c.bf16 %v2150_v33, %v2150_v33  ;;  %v1116_v61 = vsel %vm296_vm10, %v2150_v33, 0.0  ;;  %v2104_v33 = vld [vmem:[%s2755_s11 + $0x1] ss:$0 sm:$0xff] }
 0x9ec   :  { %1928 = vmatmul.msk.bf16.vlgmr.msra.gmra.mxu0 %vm296_vm10, %v1120_v34 }
 0x9ed   :  { %1405 = vmatpush.bf16.msra.mxu0 %v2069_v54 }
 0x9ee   :  { %1972 = vmatmul.msk.bf16.vlgmr.msra.gmra.mxu3 %vm71_vm0, %v2566_v2 }
 0x9fc   :  { %1973 = vmatmul.msk.bf16.vlgmr.msrb.gmra.mxu0 %vm253_vm8, %v1275_v35 }
 0xa07   :  { %v1315_v1 = vpop.f32.mrf.mxu1 }
 0xa08   :  { %v1320_v8 = vmul.f32 0.25, %v1315_v1 }
 0xa0a   :  { %v1322_v36 = vadd.f32 %v2399_v23, %v1320_v8 }
 0xa0c   :  { %v1326_v37 = vsel %vm296_vm10, %v1322_v36, -inf }
 0xa0d   :  { %1327 = vmax.xlane.f32.xlu2 %v1326_v37 }
 0xa0f   :  { %v1317_v38 = vpop.f32.mrf.mxu1 }
 0xa50   :  { %v1115_v9 = vpop.xlane.xlu0 %1114 }
 0xa61   :  { %v1136_v39 = vpop.f32.mrf.mxu3 }
 0xa69   :  { %v1138_v40 = vpop.f32.mrf.mxu3  ;;  %v1155_v41 = vpop.f32.mrf.mxu0 }
 0xa71   :  { %v1157_v43 = vpop.f32.mrf.mxu0  ;;  %v1270_v2 = vpop.f32.mrf.mxu3 }
 0xa72   :  { %v1271_v50 = vadd.f32 %v2103_v42, %v1270_v2 }
 0xa74   :  { %v1279_v44 = vpack.c.bf16 %v1271_v50, %v1271_v50 }
 0xa76   :  { %v1347_v45 = vsel %vm320_vm9, %v1279_v44, 0 }
 0xa77   :  { %1356 = vmatpush.bf16.msrb.mxu2 %v1347_v45 }
 0xa79   :  { %v1272_v46 = vpop.f32.mrf.mxu3  ;;  %v1296_v23 = vpop.f32.mrf.mxu0 }
 0xa7a   :  { %v1273_v51 = vadd.f32 %v2103_v42, %v1272_v46  ;;  %v1319_v47 = vmul.f32 0.25, %v1296_v23 }
 0xa7c   :  { %v1280_v48 = vpack.c.bf16 %v1273_v51, %v1273_v51  ;;  %v1321_v49 = vadd.f32 %v2406_v29, %v1319_v47  ;;  %v2062_v29 = vld [vmem:[%s2754_s10 + $0x10] sm:$0xff]  ;;  %s2205_s10 = smov 8  }
 0xa7d   :  { %1428 = vmatpush.bf16.msra.mxu1 %v2062_v29 }
 0xa7e   :  { %v1366_v52 = vsel %vm320_vm9, %v1280_v48, 0  ;;  %v1323_v56 = vsel %vm296_vm10, %v1321_v49, -inf }
 0xa7f   :  { %1375 = vmatpush.bf16.msrb.mxu3 %v1366_v52  ;;  %1324 = vmax.xlane.f32.xlu1 %v1323_v56  ;;  %v2070_v56 = vld [vmem:[%s2758_s14 + $0x10] sm:$0xff] }
 0xa80   :  { %v1328_v57 = vpop.xlane.xlu2 %1327 }
 0xa81   :  { %v1330_v58 = vsub.f32 %v1322_v36, %v1328_v57  ;;  %v1298_v59 = vpop.f32.mrf.mxu0 }
 0xa83   :  { %v1333_v60 = vmul.f32 1.442695, %v1330_v58 }
 0xa85   :  { %2151 = vpow2.f32 %v1333_v60 }
 0xa87   :  { %1117 = vadd.xlane.f32.xlu1 %v1116_v61 }
 0xa8b   :  { %v2152_v62 = vpop.eup %2151 }
 0xa8c   :  { %v1342_v63 = vpack.c.bf16 %v2152_v62, %v2152_v62  ;;  %v1338_v3 = vsel %vm296_vm10, %v2152_v62, 0.0 }
 0xa8d   :  { %1339 = vadd.xlane.f32.xlu0 %v1338_v3 }
 0xa8e   :  { %1976 = vmatmul.msk.bf16.vlgmr.msrb.gmra.mxu3 %vm296_vm10, %v1342_v63 }
 0xaf2   :  { %v1325_v5 = vpop.xlane.xlu1 %1324 }
 0xaf3   :  { %v1329_v6 = vsub.f32 %v1321_v49, %v1325_v5 }
 0xaf5   :  { %v1331_v7 = vmul.f32 1.442695, %v1329_v6 }
 0xaf7   :  { %2153 = vpow2.f32 %v1331_v7 }
 0xaf8   :  { %2155 = vrcp.f32 %v1115_v9 }
 0xafa   :  { %v1118_v11 = vpop.xlane.xlu1 %1117 }
 0xafb   :  { %2157 = vrcp.f32 %v1118_v11 }
 0xafd   :  { %v2154_v13 = vpop.eup %2153 }
 0xafe   :  { %v1341_v14 = vpack.c.bf16 %v2154_v13, %v2154_v13  ;;  %v1335_v4 = vsel %vm296_vm10, %v2154_v13, 0.0  ;;  %v2156_v15 = vpop.eup %2155 }
 0xaff   :  { %1336 = vadd.xlane.f32.xlu2 %v1335_v4  ;;  %v1161_v53 = vmul.f32 %v2156_v15, %v1136_v39 }
 0xb00   :  { %1975 = vmatmul.msk.bf16.vlgmr.msrb.gmra.mxu2 %vm296_vm10, %v1341_v14  ;;  %v1340_v16 = vpop.xlane.xlu0 %1339  ;;  %v2105_v14 = vld [vmem:[%s2756_s12 + $0x1] ss:$0 sm:$0xff] }
 0xb01   :  { %v2158_v55 = vpop.eup %2157  ;;  %2159 = vrcp.f32 %v1340_v16 }
 0xb02   :  { %v1162_v17 = vmul.f32 %v2158_v55, %v1155_v41 }
 0xb04   :  { %v1163_v18 = vpack.c.bf16 %v1162_v17, %v1161_v53  ;;  %v2106_v53 = vld [vmem:[%s2757_s13 + $0x1] ss:$0 sm:$0xff] }
 0xb06   :  { %1988 = vmatmul.msk.bf16.vlgmr.msra.gmra.mxu1 %vm253_vm8, %v1163_v18 }
 0xb07   :  { %v2160_v25 = vpop.eup %2159 }
 0xb11   :  { %v1377_v19 = vpop.f32.mrf.mxu3 }
 0xb12   :  { %v1384_v28 = vmul.f32 %v2160_v25, %v1377_v19 }
 0xb19   :  { %v1379_v20 = vpop.f32.mrf.mxu3 }
 0xb72   :  { %v1337_v21 = vpop.xlane.xlu2 %1336 }
 0xb73   :  { %2161 = vrcp.f32 %v1337_v21  ;;  %v2107_v21 = vld [vmem:[%s2759_s15 + $0x1] ss:$0 sm:$0xff] }
 0xb79   :  { %v2162_v26 = vpop.eup %2161 }
 0xb83   :  { %v1358_v27 = vpop.f32.mrf.mxu2  ;;  %v1430_v32 = vpop.f32.mrf.mxu1 }
 0xb84   :  { %v1383_v30 = vmul.f32 %v2162_v26, %v1358_v27 }
 0xb86   :  { %v1385_v31 = vpack.c.bf16 %v1384_v28, %v1383_v30 }
 0xb88   :  { %1983 = vmatmul.msk.bf16.vlgmr.msra.gmra.mxu0 %vm253_vm8, %v1385_v31 }
 0xb8b   :  { %v1360_v12 = vpop.f32.mrf.mxu2  ;;  %v1432_v37 = vpop.f32.mrf.mxu1 }
 0xc05   :  { %v1407_v34 = vpop.f32.mrf.mxu0 }
 0xc06   :  { %v1431_v35 = vadd.f32 %v1430_v32, %v1407_v34 }
 0xc08   :  { %v1440_v1 = vadd.f32 %v2104_v33, %v1431_v35 }
 0xc0a   :  { %v1442_v8 = vadd.f32 %v1440_v1, %v2560_v22 }
 0xc0c   :  { %v1448_v36 = vsel %vm71_vm0, %v1442_v8, 0.0 }
 0xc0d   :  { %1449 = vadd.xlane.f32.xlu1 %v1448_v36  ;;  %v1409_v38 = vpop.f32.mrf.mxu0 }
 0xc0e   :  { %v1433_v39 = vadd.f32 %v1432_v37, %v1409_v38 }
 0xc10   :  { %v1441_v40 = vadd.f32 %v2104_v33, %v1433_v39 }
 0xc12   :  { %v1443_v41 = vadd.f32 %v1441_v40, %v2562_v24  ;;  %v2071_v24 = vld [vmem:[%s2758_s14 + $0x18] sm:$0xff] }
 0xc13   :  { %1534 = vmatpush.bf16.msra.mxu2 %v2071_v24 }
 0xc14   :  { %v1451_v42 = vsel %vm71_vm0, %v1443_v41, 0.0 }
 0xc15   :  { %1452 = vadd.xlane.f32.xlu2 %v1451_v42 }
 0xc17   :  { %1535 = vmatpush.bf16.msra.mxu2 %v2070_v56 }
 0xc80   :  { %v1450_v43 = vpop.xlane.xlu1 %1449 }
 0xc81   :  { %v1454_v2 = vmul.f32 %v1450_v43, %v2319_v10  ;;  %v2075_v43 = vld [vmem:[%s2760_s16 + $0x38] sm:$0xff] }
 0xc82   :  { %1676 = vmatpush.bf16.msra.mxu3 %v2075_v43 }
 0xc83   :  { %v1456_v50 = vsub.f32 %v1442_v8, %v1454_v2 }
 0xc85   :  { %v1458_v44 = vmul.f32 %v1456_v50, %v1456_v50 }
 0xc87   :  { %v1460_v45 = vsel %vm71_vm0, %v1458_v44, 0.0 }
 0xc88   :  { %1461 = vadd.xlane.f32.xlu0 %v1460_v45  ;;  %v1453_v22 = vpop.xlane.xlu2 %1452 }
 0xc89   :  { %v1455_v46 = vmul.f32 %v1453_v22, %v2319_v10 }
 0xc8b   :  { %v1457_v23 = vsub.f32 %v1443_v41, %v1455_v46  ;;  %v2074_v46 = vld [vmem:[%s2760_s16 + $0x30] sm:$0xff] }
 0xc8c   :  { %1677 = vmatpush.bf16.msra.mxu3 %v2074_v46 }
 0xc8d   :  { %v1459_v51 = vmul.f32 %v1457_v23, %v1457_v23 }
 0xc8f   :  { %v1463_v47 = vsel %vm71_vm0, %v1459_v51, 0.0 }
 0xc90   :  { %1464 = vadd.xlane.f32.xlu1 %v1463_v47 }
 0xcfb   :  { %v1462_v48 = vpop.xlane.xlu0 %1461 }
 0xcfc   :  { %v1466_v49 = vmul.f32 %v1462_v48, %v2319_v10 }
 0xcfe   :  { %v1468_v52 = vadd.f32 1e-12, %v1466_v49 }
 0xd00   :  { %2163 = vrsqrt.f32 %v1468_v52  ;;  %vm1476_vm9 = vweird.f32 %v1468_v52 }
 0xd03   :  { %v1465_v57 = vpop.xlane.xlu1 %1464 }
 0xd04   :  { %v1467_v58 = vmul.f32 %v1465_v57, %v2319_v10 }
 0xd06   :  { %v2164_v59 = vpop.eup %2163  ;;  %v1469_v60 = vadd.f32 1e-12, %v1467_v58 }
 0xd07   :  { %v1471_v61 = vmul.f32 %v2164_v59, %v1468_v52  ;;  %vm1477_vm8 = vweird.f32 %v2164_v59  ;;  %v2073_v52 = vld [vmem:[%s2760_s16 + $0x28] sm:$0xff] }
 0xd08   :  { %2165 = vrsqrt.f32 %v1469_v60  ;;  %vm1478_vm10 = vmor %vm1476_vm9, %vm1477_vm8  ;;  %vm1486_vm7 = vweird.f32 %v1469_v60  ;;  %1678 = vmatpush.bf16.msra.mxu3 %v2073_v52 }
 0xd09   :  { %v1472_v62 = vmul.f32 %v2164_v59, %v1471_v61  ;;  %v2072_v61 = vld [vmem:[%s2760_s16 + $0x20] sm:$0xff] }
 0xd0b   :  { %v1473_v63 = vmul.f32 0.5, %v1472_v62 }
 0xd0c   :  { %1679 = vmatpush.bf16.msra.mxu3 %v2072_v61 }
 0xd0d   :  { %v1474_v3 = vsub.f32 1.5, %v1473_v63 }
 0xd0e   :  { %v2166_v29 = vpop.eup %2165 }
 0xd0f   :  { %v1475_v5 = vmul.f32 %v2164_v59, %v1474_v3  ;;  %v1481_v6 = vmul.f32 %v2166_v29, %v1469_v60  ;;  %vm1487_vm6 = vweird.f32 %v2166_v29 }
 0xd10   :  { %vm1488_vm11 = vmor %vm1486_vm7, %vm1487_vm6 }
 0xd11   :  { %v1482_v7 = vmul.f32 %v2166_v29, %v1481_v6  ;;  %v1479_v9 = vsel %vm1478_vm10, %v2164_v59, %v1475_v5 }
 0xd12   :  { %v1490_v4 = vmul.f32 %v1479_v9, %v1456_v50 }
 0xd13   :  { %v1483_v11 = vmul.f32 0.5, %v1482_v7 }
 0xd14   :  { %v1495_v17 = vmul.f32 %v2105_v14, %v1490_v4 }
 0xd15   :  { %v1484_v13 = vsub.f32 1.5, %v1483_v11 }
 0xd16   :  { %v2677_v20 = vadd.f32 %v2106_v53, %v1495_v17 }
 0xd17   :  { %v1485_v15 = vmul.f32 %v2166_v29, %v1484_v13 }
 0xd19   :  { %v1489_v55 = vsel %vm1488_vm11, %v2166_v29, %v1485_v15 }
 0xd1a   :  { %v1491_v18 = vmul.f32 %v1489_v55, %v1457_v23 }
 0xd1c   :  { %v1496_v19 = vmul.f32 %v2105_v14, %v1491_v18 }
 0xd1e   :  { %v2679_v54 = vadd.f32 %v2106_v53, %v1496_v19 }
 0xd20   :  { %v1502_v16 = vpack.c.bf16 %v2679_v54, %v2677_v20 }
 0xd22   :  { %2005 = vmatmul.msk.bf16.vlgmr.msra.gmra.mxu2 %vm71_vm0, %v1502_v16 }
 0xda5   :  { %v1537_v25 = vpop.f32.mrf.mxu2 }
 0xda6   :  { %v2687_v26 = vadd.f32 %v2107_v21, %v1537_v25 }
 0xda8   :  { %v2691_v27 = vmul.f32 %v2687_v26, %v2488_v0 }
 0xdaa   :  { %v1546_v28 = vmul.f32 %v2691_v27, %v2691_v27 }
 0xdac   :  { %v1547_v30 = vmin.f32 %v1546_v28, 16.0 }
 0xdad   :  { %v1539_v31 = vpop.f32.mrf.mxu2 }
 0xdae   :  { %v1548_v12 = vmul.f32 2.1237322e-06, %v1547_v30  ;;  %v1559_v32 = vmul.f32 3.8918573e-05, %v1547_v30  ;;  %v2695_v33 = vadd.f32 %v2107_v21, %v1539_v31 }
 0xdb0   :  { %v1549_v34 = vadd.f32 0.00028619796, %v1548_v12  ;;  %v1560_v35 = vadd.f32 0.001143296, %v1559_v32  ;;  %v2699_v1 = vmul.f32 %v2695_v33, %v2488_v0 }
 0xdb2   :  { %v1561_v8 = vmul.f32 %v1560_v35, %v1547_v30  ;;  %v1586_v36 = vmul.f32 %v2699_v1, %v2699_v1  ;;  %v1550_v37 = vmul.f32 %v1549_v34, %v1547_v30 }
 0xdb4   :  { %v1562_v38 = vadd.f32 0.014752088, %v1561_v8  ;;  %v1587_v39 = vmin.f32 %v1586_v36, 16.0  ;;  %v1551_v2 = vadd.f32 0.0036580483, %v1550_v37 }
 0xdb6   :  { %v1563_v40 = vmul.f32 %v1562_v38, %v1547_v30  ;;  %v1588_v41 = vmul.f32 2.1237322e-06, %v1587_v39  ;;  %v1599_v42 = vmul.f32 3.8918573e-05, %v1587_v39  ;;  %v1552_v51 = vmul.f32 %v1551_v2, %v1547_v30 }
 0xdb8   :  { %v1564_v50 = vadd.f32 0.112945676, %v1563_v40  ;;  %v1589_v44 = vadd.f32 0.00028619796, %v1588_v41  ;;  %v1600_v0 = vadd.f32 0.001143296, %v1599_v42 }
 0xdb9   :  { %v1553_v57 = vadd.f32 0.05243302, %v1552_v51 }
 0xdba   :  { %v1565_v45 = vmul.f32 %v1564_v50, %v1547_v30  ;;  %v1590_v22 = vmul.f32 %v1589_v44, %v1587_v39  ;;  %v1601_v23 = vmul.f32 %v1600_v0, %v1587_v39  ;;  %v1542_v44 = vmul.f32 0.5, %v2687_v26 }
 0xdbb   :  { %v1554_v63 = vmul.f32 %v1553_v57, %v1547_v30  ;;  %v1543_v0 = vmul.f32 0.5, %v2695_v33 }
 0xdbc   :  { %v1566_v47 = vadd.f32 0.4994258, %v1565_v45  ;;  %v1591_v24 = vadd.f32 0.0036580483, %v1590_v22  ;;  %v1602_v48 = vadd.f32 0.014752088, %v1601_v23 }
 0xdbd   :  { %v1555_v7 = vadd.f32 0.18741608, %v1554_v63 }
 0xdbe   :  { %v1567_v49 = vmul.f32 %v1566_v47, %v1547_v30  ;;  %v1603_v56 = vmul.f32 %v1602_v48, %v1587_v39  ;;  %v1592_v59 = vmul.f32 %v1591_v24, %v1587_v39 }
 0xdbf   :  { %v1556_v4 = vmul.f32 %v1555_v7, %v1547_v30 }
 0xdc0   :  { %v1568_v58 = vadd.f32 1.0, %v1567_v49  ;;  %v1604_v60 = vadd.f32 0.112945676, %v1603_v56  ;;  %v1593_v3 = vadd.f32 0.05243302, %v1592_v59 }
 0xdc1   :  { %v1557_v19 = vadd.f32 1.1283791, %v1556_v4 }
 0xdc2   :  { %2167 = vrcp.f32 %v1568_v58  ;;  %v1605_v62 = vmul.f32 %v1604_v60, %v1587_v39  ;;  %v1594_v11 = vmul.f32 %v1593_v3, %v1587_v39  ;;  %v1580_v55 = vand.u32 2147483648, %v1568_v58 }
 0xdc3   :  { %v1578_v17 = vand.u32 2147483647, %v1568_v58  ;;  %vm1574_vm13 = vweird.f32 %v1568_v58  ;;  %v1558_v32 = vmul.f32 %v1557_v19, %v2691_v27 }
 0xdc4   :  { %v1606_v29 = vadd.f32 0.4994258, %v1605_v62  ;;  %v1595_v53 = vadd.f32 0.18741608, %v1594_v11  ;;  %v1581_v25 = vor.u32 1.1754944e-38, %v1580_v55 }
 0xdc5   :  { %vm1579_vm1 = vcmp.eq.f32.partialorder %v1578_v17, 8.507059e+37 }
 0xdc6   :  { %v1607_v5 = vmul.f32 %v1606_v29, %v1587_v39  ;;  %v1596_v28 = vmul.f32 %v1595_v53, %v1587_v39 }
 0xdc8   :  { %v2168_v6 = vpop.eup %2167  ;;  %v1608_v13 = vadd.f32 1.0, %v1607_v5  ;;  %v1597_v30 = vadd.f32 1.1283791, %v1596_v28 }
 0xdc9   :  { %v1570_v9 = vmul.f32 %v2168_v6, %v1568_v58  ;;  %vm1575_vm12 = vweird.f32 %v2168_v6 }
 0xdca   :  { %2169 = vrcp.f32 %v1608_v13  ;;  %vm1576_vm15 = vmor %vm1574_vm13, %vm1575_vm12  ;;  %v1620_v35 = vand.u32 2147483648, %v1608_v13  ;;  %v1618_v37 = vand.u32 2147483647, %v1608_v13  ;;  %vm1614_vm3 = vweird.f32 %v1608_v13 }
 0xdcb   :  { %v1571_v14 = vsub.f32 1.0, %v1570_v9  ;;  %v1598_v42 = vmul.f32 %v1597_v30, %v2699_v1  ;;  %v2108_v1 = vld [vmem:[%s2761_s17 + $0x1] ss:$0 sm:$0xff] }
 0xdcc   :  { %v1621_v40 = vor.u32 1.1754944e-38, %v1620_v35  ;;  %vm1619_vm5 = vcmp.eq.f32.partialorder %v1618_v37, 8.507059e+37 }
 0xdcd   :  { %v1572_v15 = vmul.f32 %v2168_v6, %v1571_v14 }
 0xdcf   :  { %v1573_v18 = vadd.f32 %v2168_v6, %v1572_v15 }
 0xdd0   :  { %v2170_v16 = vpop.eup %2169 }
 0xdd1   :  { %v1577_v21 = vsel %vm1576_vm15, %v2168_v6, %v1573_v18  ;;  %v1610_v31 = vmul.f32 %v2170_v16, %v1608_v13  ;;  %vm1615_vm2 = vweird.f32 %v2170_v16  ;;  %v2109_v18 = vld [vmem:[%s2762_s18 + $0x1] ss:$0 sm:$0xff]  ;;  %s2203_s18 = smov [#allocation2]  }
 0xdd2   :  { %v1582_v12 = vsel %vm1579_vm1, %v1581_v25, %v1577_v21  ;;  %vm1616_vm4 = vmor %vm1614_vm3, %vm1615_vm2  ;;  %v2110_v21 = vld [vmem:[%s2763_s19 + $0x1] ss:$0 sm:$0xff]  ;;  %s1752_s23 = sshll.u32 %s2203_s18, 4  ;;  %s2204_s19 = smov 128   ;;  %s1753_s23 = int_to_ptr.vmem [resolvable:$true] %s1752_s23 }
 0xdd3   :  { %v1611_v34 = vsub.f32 1.0, %v1610_v31  ;;  %v1583_v8 = vmul.f32 %v1582_v12, %v1558_v32 }
 0xdd5   :  { %v1612_v36 = vmul.f32 %v2170_v16, %v1611_v34  ;;  %v2006_v41 = vclamps-f32 %v1583_v8, 1.0 }
 0xdd7   :  { %v1613_v38 = vadd.f32 %v2170_v16, %v1612_v36  ;;  %v1626_v50 = vadd.f32 1.0, %v2006_v41 }
 0xdd9   :  { %v1617_v39 = vsel %vm1616_vm4, %v2170_v16, %v1613_v38  ;;  %v1628_v22 = vmul.f32 %v1626_v50, %v1542_v44 }
 0xdda   :  { %v1622_v43 = vsel %vm1619_vm5, %v1621_v40, %v1617_v39 }
 0xddb   :  { %v1623_v2 = vmul.f32 %v1622_v43, %v1598_v42 }
 0xddd   :  { %v2007_v27 = vclamps-f32 %v1623_v2, 1.0 }
 0xddf   :  { %v1627_v45 = vadd.f32 1.0, %v2007_v27 }
 0xde1   :  { %v1629_v46 = vmul.f32 %v1627_v45, %v1543_v0 }
 0xde3   :  { %v1630_v23 = vpack.c.bf16 %v1629_v46, %v1628_v22 }
 0xde5   :  { %2033 = vmatmul.msk.bf16.vlgmr.msra.gmra.mxu3 %vm865_vm14, %v1630_v23 }
 0xe68   :  { %v1681_v51 = vpop.f32.mrf.mxu3 }
 0xe69   :  { %v1682_v47 = vadd.f32 %v2108_v1, %v1681_v51 }
 0xe6b   :  { %v1686_v24 = vadd.f32 %v1682_v47, %v2677_v20 }
 0xe6d   :  { %v1692_v48 = vsel %vm71_vm0, %v1686_v24, 0.0 }
 0xe6e   :  { %1693 = vadd.xlane.f32.xlu2 %v1692_v48 }
 0xe70   :  { %v1683_v26 = vpop.f32.mrf.mxu3 }
 0xe71   :  { %v1684_v49 = vadd.f32 %v2108_v1, %v1683_v26 }
 0xe73   :  { %v1687_v33 = vadd.f32 %v1684_v49, %v2679_v54 }
 0xe75   :  { %v1695_v52 = vsel %vm71_vm0, %v1687_v33, 0.0 }
 0xe76   :  { %1696 = vadd.xlane.f32.xlu0 %v1695_v52 }
 0xee1   :  { %v1694_v56 = vpop.xlane.xlu2 %1693 }
 0xee2   :  { %v1698_v57 = vmul.f32 %v1694_v56, %v2319_v10 }
 0xee4   :  { %v1700_v58 = vsub.f32 %v1686_v24, %v1698_v57 }
 0xee6   :  { %v1702_v59 = vmul.f32 %v1700_v58, %v1700_v58 }
 0xee8   :  { %v1704_v60 = vsel %vm71_vm0, %v1702_v59, 0.0 }
 0xee9   :  { %v1697_v61 = vpop.xlane.xlu0 %1696  ;;  %1705 = vadd.xlane.f32.xlu1 %v1704_v60 }
 0xeea   :  { %v1699_v20 = vmul.f32 %v1697_v61, %v2319_v10 }
 0xeec   :  { %v1701_v62 = vsub.f32 %v1687_v33, %v1699_v20 }
 0xeee   :  { %v1703_v63 = vmul.f32 %v1701_v62, %v1701_v62 }
 0xef0   :  { %v1707_v3 = vsel %vm71_vm0, %v1703_v63, 0.0 }
 0xef1   :  { %1708 = vadd.xlane.f32.xlu2 %v1707_v3 }
 0xf5c   :  { %v1706_v54 = vpop.xlane.xlu1 %1705 }
 0xf5d   :  { %v1710_v29 = vmul.f32 %v1706_v54, %v2319_v10 }
 0xf5f   :  { %v1712_v5 = vadd.f32 1e-12, %v1710_v29 }
 0xf61   :  { %2171 = vrsqrt.f32 %v1712_v5  ;;  %vm1720_vm8 = vweird.f32 %v1712_v5 }
 0xf64   :  { %v1709_v6 = vpop.xlane.xlu2 %1708 }
 0xf65   :  { %v1711_v7 = vmul.f32 %v1709_v6, %v2319_v10 }
 0xf67   :  { %v2172_v9 = vpop.eup %2171  ;;  %v1713_v11 = vadd.f32 1e-12, %v1711_v7 }
 0xf68   :  { %v1715_v13 = vmul.f32 %v2172_v9, %v1712_v5  ;;  %vm1721_vm14 = vweird.f32 %v2172_v9 }
 0xf69   :  { %2173 = vrsqrt.f32 %v1713_v11  ;;  %vm1722_vm9 = vmor %vm1720_vm8, %vm1721_vm14  ;;  %vm1730_vm6 = vweird.f32 %v1713_v11 }
 0xf6a   :  { %v1716_v14 = vmul.f32 %v2172_v9, %v1715_v13 }
 0xf6c   :  { %v1717_v4 = vmul.f32 0.5, %v1716_v14 }
 0xf6e   :  { %v1718_v15 = vsub.f32 1.5, %v1717_v4 }
 0xf6f   :  { %v2174_v55 = vpop.eup %2173 }
 0xf70   :  { %v1719_v53 = vmul.f32 %v2172_v9, %v1718_v15  ;;  %v1725_v17 = vmul.f32 %v2174_v55, %v1713_v11  ;;  %vm1731_vm10 = vweird.f32 %v2174_v55 }
 0xf71   :  { %vm1732_vm7 = vmor %vm1730_vm6, %vm1731_vm10 }
 0xf72   :  { %v1723_v19 = vsel %vm1722_vm9, %v2172_v9, %v1719_v53  ;;  %v1726_v16 = vmul.f32 %v2174_v55, %v1725_v17 }
 0xf73   :  { %v1734_v10 = vmul.f32 %v1723_v19, %v1700_v58 }
 0xf74   :  { %v1727_v25 = vmul.f32 0.5, %v1726_v16 }
 0xf75   :  { %v1739_v28 = vmul.f32 %v2109_v18, %v1734_v10 }
 0xf76   :  { %v1728_v31 = vsub.f32 1.5, %v1727_v25 }
 0xf77   :  { %v1744_v12 = vadd.f32 %v2110_v21, %v1739_v28 }
 0xf78   :  { %v1729_v32 = vmul.f32 %v2174_v55, %v1728_v31 }
 0xf79   :  { %1746 = vst.msk [vmem:[#allocation2] sm:$0xff] %vm71_vm0, %v1744_v12 }
 0xf7a   :  { %v1733_v34 = vsel %vm1732_vm7, %v2174_v55, %v1729_v32 }
 0xf7b   :  { %v1735_v30 = vmul.f32 %v1733_v34, %v1701_v62 }
 0xf7d   :  { %v1740_v35 = vmul.f32 %v2109_v18, %v1735_v30 }
 0xf7f   :  { %v1745_v8 = vadd.f32 %v2110_v21, %v1740_v35 }
 0xf81   :  { %1747 = vst.msk [vmem:[#allocation2 + $0x8] sm:$0xff] %vm71_vm0, %v1745_v8 }
 0xf82   :  { %1760 = dma.vmem_to_hbm [thread:$0]  %s1753_s23, 256, %s1755_s25, [#allocation3], %s2204_s19, %s2204_s19, %s2205_s10  }
 0xf83   :  { %2199 = dma.done.wait [#allocation3], 256  }
 0xf84   :  { %2200 = vsyncadd [#allocation3], 4294967040 }
 0xf85   :  { %1765 = vsyncpa [#allocation3], 1 }

</bundles_post_ra>
